<compile_context>
chip_gen: v5e
topology: v5e:2x2
jax: 0.10.0
libtpu: 0.0.40
codegen_flags: <defaults>
</compile_context>

<pallas_src>
import jax
import jax.numpy as jnp
from jax.experimental import pallas as pl
from jax.experimental.pallas import tpu as pltpu


def _round_up(x, m):
    return ((x + m - 1) // m) * m


def _make_critic_kernel(ds, da, hidden, l2_on_mxu):
    """Build the kernel for static feature sizes.

    Weight-slab column layout (shape (hidden, n_cols), f32):
      [0, hidden)        W2^T  (hidden, hidden)   -- lane-aligned for the MXU
      [o_ws, o_ws+ds)    Ws^T  (hidden, ds)
      [o_bs]             bs    (hidden, 1)
      [o_wa, o_wa+da)    Wa^T  (hidden, da)
      [o_ba]             ba    (hidden, 1)
      [o_b2]             b2    (hidden, 1)
      [o_w3]             W3    (hidden, 1)
      [o_b3]             b3    (scalar broadcast to a (hidden, 1) column)
    """
    o_w2 = 0
    o_ws = hidden
    o_bs = o_ws + ds
    o_wa = o_bs + 1
    o_ba = o_wa + da
    o_b2 = o_ba + 1
    o_w3 = o_b2 + 1
    o_b3 = o_w3 + 1
    n_cols = o_b3 + 1

    def kernel(x_ref, w_ref, out_ref):
        x = x_ref[...]            # (ds+da, BM) f32 : batch along lanes
        w = w_ref[...]            # (hidden, n_cols) f32 packed slab

        # ---- Layer 1 on the VPU (K = ds / da is tiny): broadcast FMAs ----
        acc_s = w[:, o_bs:o_bs + 1]                        # (H,1) -> (H,BM)
        for k in range(ds):                                # static unroll
            acc_s = acc_s + w[:, o_ws + k:o_ws + k + 1] * x[k:k + 1, :]
        acc_a = w[:, o_ba:o_ba + 1]
        for k in range(da):
            acc_a = acc_a + w[:, o_wa + k:o_wa + k + 1] * x[ds + k:ds + k + 1, :]
        l1 = jnp.maximum(acc_s, 0.0) + jnp.maximum(acc_a, 0.0)    # (H, BM)

        # ---- Layer 2: 32x32 contraction, batch stays lane-dense ----------
        if l2_on_mxu:
            # f32 MXU matmul, fp32 contraction precision (no bf16 cast).
            z2 = jnp.dot(w[:, o_w2:o_w2 + hidden], l1,
                         preferred_element_type=jnp.float32,
                         precision=jax.lax.Precision.HIGHEST)
            z2 = z2 + w[:, o_b2:o_b2 + 1]
        else:
            # Tiny-batch latency path (v5e/v6e): 32 VPU FMAs, no MXU
            # fill/drain round trip on the serial dependency chain.
            z2 = w[:, o_b2:o_b2 + 1]
            for k in range(hidden):                        # static unroll
                z2 = z2 + w[:, o_w2 + k:o_w2 + k + 1] * l1[k:k + 1, :]
        l2 = jnp.maximum(z2, 0.0)                                  # (H, BM)

        # ---- Layer 3 (out dim = 1): sublane reduce, lane-dense output ----
        q = (jnp.sum(l2 * w[:, o_w3:o_w3 + 1], axis=0, keepdims=True)
             + w[0:1, o_b3:o_b3 + 1])                              # (1, BM)
        out_ref[...] = q.astype(out_ref.dtype)

    return kernel, n_cols


def critic_forward(state, action, slab, *, block_b=512):
    """Pallas forward of the DDPG Critic.

    state: (B, state_dim) f32, action: (B, action_dim) f32,
    slab:  packed weights from pack_params().  Returns (B, 1) f32.
    """
    B, ds = state.shape
    da = action.shape[1]
    hidden = slab.shape[0]

    # Layer 2 on the MXU for training-sized batches, on the VPU for tiny B.
    kernel, n_cols = _make_critic_kernel(ds, da, hidden, l2_on_mxu=B > 32)
    assert slab.shape == (hidden, n_cols)

    # Batch-along-lanes activations: (features, B).
    x = jnp.concatenate([state, action], axis=1).T

    # Lane-aligned batch blocks; one block up to block_b lanes, then a
    # "parallel" grid axis (shards across TensorCores on v7x for large B).
    bm = min(_round_up(block_b, 128), _round_up(B, 128))
    b_pad = _round_up(B, bm)
    if b_pad != B:
        x = jnp.pad(x, ((0, 0), (0, b_pad - B)))

    out = pl.pallas_call(
        kernel,
        out_shape=jax.ShapeDtypeStruct((1, b_pad), jnp.float32),
        grid=(b_pad // bm,),
        in_specs=[pl.BlockSpec((ds + da, bm), lambda i: (0, i)),
                  pl.BlockSpec((hidden, n_cols), lambda i: (0, 0))],
        out_specs=pl.BlockSpec((1, bm), lambda i: (0, i)),
        compiler_params=pltpu.CompilerParams(
            dimension_semantics=("parallel",)),
    )(x, slab)
    return out[0, :B].reshape(B, 1)


def init_linear(key, in_features, out_features):
    """PyTorch-style Linear init; W as (in, out), b as (1, out)."""
    kw, kb = jax.random.split(key)
    bound = 1.0 / jnp.sqrt(jnp.float32(in_features))
    w = jax.random.uniform(kw, (in_features, out_features), jnp.float32, -bound, bound)
    b = jax.random.uniform(kb, (1, out_features), jnp.float32, -bound, bound)
    return w, b


def pack_params(ws, bs, wa, ba, w2, b2, w3, b3):
    """One-time packing of all weights/biases into a single (hidden, 40) f32
    slab (column layout documented in _make_critic_kernel)."""
    hidden = ws.shape[1]
    b3_col = jnp.broadcast_to(jnp.reshape(b3, (1, 1)), (hidden, 1))
    return jnp.concatenate(
        [w2.T, ws.T, bs.T, wa.T, ba.T, b2.T, w3, b3_col],
        axis=1).astype(jnp.float32)


def critic_reference(state, action, raw_params):
    ws, bs, wa, ba, w2, b2, w3, b3 = raw_params
    hp = jax.lax.Precision.HIGHEST
    l1 = (jnp.maximum(jnp.dot(state, ws, precision=hp) + bs, 0.0)
          + jnp.maximum(jnp.dot(action, wa, precision=hp) + ba, 0.0))
    l2 = jnp.maximum(jnp.dot(l1, w2, precision=hp) + b2, 0.0)
    return jnp.dot(l2, w3, precision=hp) + b3


if __name__ == "__main__":
    # MountainCarContinuous: state_dim=2, action_dim=1
    state_dim, action_dim, hidden = 2, 1, 32

    key = jax.random.PRNGKey(0)
    k_s, k_a, k1, k2, k3, k4 = jax.random.split(key, 6)

    ws, bs = init_linear(k1, state_dim, hidden)   # sl_1
    wa, ba = init_linear(k2, action_dim, hidden)  # al_1
    w2, b2 = init_linear(k3, hidden, hidden)      # sal_2
    w3, b3 = init_linear(k4, hidden, 1)           # sal_3
    raw_params = (ws, bs, wa, ba, w2, b2, w3, b3)
    slab = pack_params(*raw_params)

    # --- Small-batch (latency) path: layer 2 on the VPU, exact f32 --------
    B = 8
    state = jax.random.normal(k_s, (B, state_dim), jnp.float32)
    action = jax.random.normal(k_a, (B, action_dim), jnp.float32)
    qval = jax.block_until_ready(critic_forward(state, action, slab))
    ref = critic_reference(state, action, raw_params)
    assert qval.shape == (B, 1)
    assert jnp.allclose(qval, ref, atol=1e-4, rtol=1e-4), \
        float(jnp.max(jnp.abs(qval - ref)))

    # --- Training-sized batch: MXU layer 2, 2-step "parallel" grid --------
    B2 = 640                                   # bm=512 -> grid=(2,), padded
    k_s2, k_a2 = jax.random.split(jax.random.PRNGKey(1))
    state2 = jax.random.normal(k_s2, (B2, state_dim), jnp.float32)
    action2 = jax.random.normal(k_a2, (B2, action_dim), jnp.float32)
    qval2 = jax.block_until_ready(critic_forward(state2, action2, slab))
    ref2 = critic_reference(state2, action2, raw_params)
    assert qval2.shape == (B2, 1)
    assert jnp.allclose(qval2, ref2, atol=1e-4, rtol=1e-4), \
        float(jnp.max(jnp.abs(qval2 - ref2)))

    print("KERNEL_OK")
</pallas_src>

<mosaic_0001>
module attributes {stable_mosaic.version = 11 : i64} {
  func.func @kernel(%arg0: i32, %arg1: memref<3x128xf32, #tpu.memory_space<vmem>>, %arg2: memref<32x40xf32, #tpu.memory_space<vmem>>, %arg3: memref<1x128xf32, #tpu.memory_space<vmem>>) attributes {dimension_semantics = [#tpu.dimension_semantics<parallel>], iteration_bounds = array<i64: 1>, scalar_prefetch = 0 : i64, scratch_operands = 0 : i64, tpu.core_type = #tpu.core_type<tc>, window_params = [{transform_indices = @transform_0, window_bounds = array<i64: 3, 128>}, {pipeline_mode = #tpu.pipeline_mode<synchronous>, transform_indices = @transform_1, window_bounds = array<i64: 32, 40>}, {transform_indices = @transform_2, window_bounds = array<i64: 1, 128>}]} {
    %c0 = arith.constant 0 : index
    %c0_0 = arith.constant 0 : index
    %0 = vector.load %arg1[%c0, %c0_0] : memref<3x128xf32, #tpu.memory_space<vmem>>, vector<3x128xf32>
    %c0_1 = arith.constant 0 : index
    %c0_2 = arith.constant 0 : index
    %1 = vector.load %arg2[%c0_1, %c0_2] : memref<32x40xf32, #tpu.memory_space<vmem>>, vector<32x40xf32>
    %2 = vector.extract_strided_slice %1 {offsets = [0, 34], sizes = [32, 1], strides = [1, 1]} : vector<32x40xf32> to vector<32x1xf32>
    %3 = vector.extract_strided_slice %1 {offsets = [0, 32], sizes = [32, 1], strides = [1, 1]} : vector<32x40xf32> to vector<32x1xf32>
    %4 = vector.extract_strided_slice %0 {offsets = [0, 0], sizes = [1, 128], strides = [1, 1]} : vector<3x128xf32> to vector<1x128xf32>
    %5 = vector.broadcast %3 : vector<32x1xf32> to vector<32x128xf32>
    %6 = vector.broadcast %4 : vector<1x128xf32> to vector<32x128xf32>
    %7 = arith.mulf %5, %6 : vector<32x128xf32>
    %8 = vector.broadcast %2 : vector<32x1xf32> to vector<32x128xf32>
    %9 = arith.addf %8, %7 : vector<32x128xf32>
    %10 = vector.extract_strided_slice %1 {offsets = [0, 33], sizes = [32, 1], strides = [1, 1]} : vector<32x40xf32> to vector<32x1xf32>
    %11 = vector.extract_strided_slice %0 {offsets = [1, 0], sizes = [1, 128], strides = [1, 1]} : vector<3x128xf32> to vector<1x128xf32>
    %12 = vector.broadcast %10 : vector<32x1xf32> to vector<32x128xf32>
    %13 = vector.broadcast %11 : vector<1x128xf32> to vector<32x128xf32>
    %14 = arith.mulf %12, %13 : vector<32x128xf32>
    %15 = arith.addf %9, %14 : vector<32x128xf32>
    %16 = vector.extract_strided_slice %1 {offsets = [0, 36], sizes = [32, 1], strides = [1, 1]} : vector<32x40xf32> to vector<32x1xf32>
    %17 = vector.extract_strided_slice %1 {offsets = [0, 35], sizes = [32, 1], strides = [1, 1]} : vector<32x40xf32> to vector<32x1xf32>
    %18 = vector.extract_strided_slice %0 {offsets = [2, 0], sizes = [1, 128], strides = [1, 1]} : vector<3x128xf32> to vector<1x128xf32>
    %19 = vector.broadcast %17 : vector<32x1xf32> to vector<32x128xf32>
    %20 = vector.broadcast %18 : vector<1x128xf32> to vector<32x128xf32>
    %21 = arith.mulf %19, %20 : vector<32x128xf32>
    %22 = vector.broadcast %16 : vector<32x1xf32> to vector<32x128xf32>
    %23 = arith.addf %22, %21 : vector<32x128xf32>
    %cst = arith.constant 0.000000e+00 : f32
    %24 = vector.broadcast %cst : f32 to vector<32x128xf32>
    %25 = arith.maximumf %15, %24 : vector<32x128xf32>
    %cst_3 = arith.constant 0.000000e+00 : f32
    %26 = vector.broadcast %cst_3 : f32 to vector<32x128xf32>
    %27 = arith.maximumf %23, %26 : vector<32x128xf32>
    %28 = arith.addf %25, %27 : vector<32x128xf32>
    %29 = vector.extract_strided_slice %1 {offsets = [0, 37], sizes = [32, 1], strides = [1, 1]} : vector<32x40xf32> to vector<32x1xf32>
    %30 = vector.extract_strided_slice %1 {offsets = [0, 0], sizes = [32, 1], strides = [1, 1]} : vector<32x40xf32> to vector<32x1xf32>
    %31 = vector.extract_strided_slice %28 {offsets = [0, 0], sizes = [1, 128], strides = [1, 1]} : vector<32x128xf32> to vector<1x128xf32>
    %32 = vector.broadcast %30 : vector<32x1xf32> to vector<32x128xf32>
    %33 = vector.broadcast %31 : vector<1x128xf32> to vector<32x128xf32>
    %34 = arith.mulf %32, %33 : vector<32x128xf32>
    %35 = vector.broadcast %29 : vector<32x1xf32> to vector<32x128xf32>
    %36 = arith.addf %35, %34 : vector<32x128xf32>
    %37 = vector.extract_strided_slice %1 {offsets = [0, 1], sizes = [32, 1], strides = [1, 1]} : vector<32x40xf32> to vector<32x1xf32>
    %38 = vector.extract_strided_slice %28 {offsets = [1, 0], sizes = [1, 128], strides = [1, 1]} : vector<32x128xf32> to vector<1x128xf32>
    %39 = vector.broadcast %37 : vector<32x1xf32> to vector<32x128xf32>
    %40 = vector.broadcast %38 : vector<1x128xf32> to vector<32x128xf32>
    %41 = arith.mulf %39, %40 : vector<32x128xf32>
    %42 = arith.addf %36, %41 : vector<32x128xf32>
    %43 = vector.extract_strided_slice %1 {offsets = [0, 2], sizes = [32, 1], strides = [1, 1]} : vector<32x40xf32> to vector<32x1xf32>
    %44 = vector.extract_strided_slice %28 {offsets = [2, 0], sizes = [1, 128], strides = [1, 1]} : vector<32x128xf32> to vector<1x128xf32>
    %45 = vector.broadcast %43 : vector<32x1xf32> to vector<32x128xf32>
    %46 = vector.broadcast %44 : vector<1x128xf32> to vector<32x128xf32>
    %47 = arith.mulf %45, %46 : vector<32x128xf32>
    %48 = arith.addf %42, %47 : vector<32x128xf32>
    %49 = vector.extract_strided_slice %1 {offsets = [0, 3], sizes = [32, 1], strides = [1, 1]} : vector<32x40xf32> to vector<32x1xf32>
    %50 = vector.extract_strided_slice %28 {offsets = [3, 0], sizes = [1, 128], strides = [1, 1]} : vector<32x128xf32> to vector<1x128xf32>
    %51 = vector.broadcast %49 : vector<32x1xf32> to vector<32x128xf32>
    %52 = vector.broadcast %50 : vector<1x128xf32> to vector<32x128xf32>
    %53 = arith.mulf %51, %52 : vector<32x128xf32>
    %54 = arith.addf %48, %53 : vector<32x128xf32>
    %55 = vector.extract_strided_slice %1 {offsets = [0, 4], sizes = [32, 1], strides = [1, 1]} : vector<32x40xf32> to vector<32x1xf32>
    %56 = vector.extract_strided_slice %28 {offsets = [4, 0], sizes = [1, 128], strides = [1, 1]} : vector<32x128xf32> to vector<1x128xf32>
    %57 = vector.broadcast %55 : vector<32x1xf32> to vector<32x128xf32>
    %58 = vector.broadcast %56 : vector<1x128xf32> to vector<32x128xf32>
    %59 = arith.mulf %57, %58 : vector<32x128xf32>
    %60 = arith.addf %54, %59 : vector<32x128xf32>
    %61 = vector.extract_strided_slice %1 {offsets = [0, 5], sizes = [32, 1], strides = [1, 1]} : vector<32x40xf32> to vector<32x1xf32>
    %62 = vector.extract_strided_slice %28 {offsets = [5, 0], sizes = [1, 128], strides = [1, 1]} : vector<32x128xf32> to vector<1x128xf32>
    %63 = vector.broadcast %61 : vector<32x1xf32> to vector<32x128xf32>
    %64 = vector.broadcast %62 : vector<1x128xf32> to vector<32x128xf32>
    %65 = arith.mulf %63, %64 : vector<32x128xf32>
    %66 = arith.addf %60, %65 : vector<32x128xf32>
    %67 = vector.extract_strided_slice %1 {offsets = [0, 6], sizes = [32, 1], strides = [1, 1]} : vector<32x40xf32> to vector<32x1xf32>
    %68 = vector.extract_strided_slice %28 {offsets = [6, 0], sizes = [1, 128], strides = [1, 1]} : vector<32x128xf32> to vector<1x128xf32>
    %69 = vector.broadcast %67 : vector<32x1xf32> to vector<32x128xf32>
    %70 = vector.broadcast %68 : vector<1x128xf32> to vector<32x128xf32>
    %71 = arith.mulf %69, %70 : vector<32x128xf32>
    %72 = arith.addf %66, %71 : vector<32x128xf32>
    %73 = vector.extract_strided_slice %1 {offsets = [0, 7], sizes = [32, 1], strides = [1, 1]} : vector<32x40xf32> to vector<32x1xf32>
    %74 = vector.extract_strided_slice %28 {offsets = [7, 0], sizes = [1, 128], strides = [1, 1]} : vector<32x128xf32> to vector<1x128xf32>
    %75 = vector.broadcast %73 : vector<32x1xf32> to vector<32x128xf32>
    %76 = vector.broadcast %74 : vector<1x128xf32> to vector<32x128xf32>
    %77 = arith.mulf %75, %76 : vector<32x128xf32>
    %78 = arith.addf %72, %77 : vector<32x128xf32>
    %79 = vector.extract_strided_slice %1 {offsets = [0, 8], sizes = [32, 1], strides = [1, 1]} : vector<32x40xf32> to vector<32x1xf32>
    %80 = vector.extract_strided_slice %28 {offsets = [8, 0], sizes = [1, 128], strides = [1, 1]} : vector<32x128xf32> to vector<1x128xf32>
    %81 = vector.broadcast %79 : vector<32x1xf32> to vector<32x128xf32>
    %82 = vector.broadcast %80 : vector<1x128xf32> to vector<32x128xf32>
    %83 = arith.mulf %81, %82 : vector<32x128xf32>
    %84 = arith.addf %78, %83 : vector<32x128xf32>
    %85 = vector.extract_strided_slice %1 {offsets = [0, 9], sizes = [32, 1], strides = [1, 1]} : vector<32x40xf32> to vector<32x1xf32>
    %86 = vector.extract_strided_slice %28 {offsets = [9, 0], sizes = [1, 128], strides = [1, 1]} : vector<32x128xf32> to vector<1x128xf32>
    %87 = vector.broadcast %85 : vector<32x1xf32> to vector<32x128xf32>
    %88 = vector.broadcast %86 : vector<1x128xf32> to vector<32x128xf32>
    %89 = arith.mulf %87, %88 : vector<32x128xf32>
    %90 = arith.addf %84, %89 : vector<32x128xf32>
    %91 = vector.extract_strided_slice %1 {offsets = [0, 10], sizes = [32, 1], strides = [1, 1]} : vector<32x40xf32> to vector<32x1xf32>
    %92 = vector.extract_strided_slice %28 {offsets = [10, 0], sizes = [1, 128], strides = [1, 1]} : vector<32x128xf32> to vector<1x128xf32>
    %93 = vector.broadcast %91 : vector<32x1xf32> to vector<32x128xf32>
    %94 = vector.broadcast %92 : vector<1x128xf32> to vector<32x128xf32>
    %95 = arith.mulf %93, %94 : vector<32x128xf32>
    %96 = arith.addf %90, %95 : vector<32x128xf32>
    %97 = vector.extract_strided_slice %1 {offsets = [0, 11], sizes = [32, 1], strides = [1, 1]} : vector<32x40xf32> to vector<32x1xf32>
    %98 = vector.extract_strided_slice %28 {offsets = [11, 0], sizes = [1, 128], strides = [1, 1]} : vector<32x128xf32> to vector<1x128xf32>
    %99 = vector.broadcast %97 : vector<32x1xf32> to vector<32x128xf32>
    %100 = vector.broadcast %98 : vector<1x128xf32> to vector<32x128xf32>
    %101 = arith.mulf %99, %100 : vector<32x128xf32>
    %102 = arith.addf %96, %101 : vector<32x128xf32>
    %103 = vector.extract_strided_slice %1 {offsets = [0, 12], sizes = [32, 1], strides = [1, 1]} : vector<32x40xf32> to vector<32x1xf32>
    %104 = vector.extract_strided_slice %28 {offsets = [12, 0], sizes = [1, 128], strides = [1, 1]} : vector<32x128xf32> to vector<1x128xf32>
    %105 = vector.broadcast %103 : vector<32x1xf32> to vector<32x128xf32>
    %106 = vector.broadcast %104 : vector<1x128xf32> to vector<32x128xf32>
    %107 = arith.mulf %105, %106 : vector<32x128xf32>
    %108 = arith.addf %102, %107 : vector<32x128xf32>
    %109 = vector.extract_strided_slice %1 {offsets = [0, 13], sizes = [32, 1], strides = [1, 1]} : vector<32x40xf32> to vector<32x1xf32>
    %110 = vector.extract_strided_slice %28 {offsets = [13, 0], sizes = [1, 128], strides = [1, 1]} : vector<32x128xf32> to vector<1x128xf32>
    %111 = vector.broadcast %109 : vector<32x1xf32> to vector<32x128xf32>
    %112 = vector.broadcast %110 : vector<1x128xf32> to vector<32x128xf32>
    %113 = arith.mulf %111, %112 : vector<32x128xf32>
    %114 = arith.addf %108, %113 : vector<32x128xf32>
    %115 = vector.extract_strided_slice %1 {offsets = [0, 14], sizes = [32, 1], strides = [1, 1]} : vector<32x40xf32> to vector<32x1xf32>
    %116 = vector.extract_strided_slice %28 {offsets = [14, 0], sizes = [1, 128], strides = [1, 1]} : vector<32x128xf32> to vector<1x128xf32>
    %117 = vector.broadcast %115 : vector<32x1xf32> to vector<32x128xf32>
    %118 = vector.broadcast %116 : vector<1x128xf32> to vector<32x128xf32>
    %119 = arith.mulf %117, %118 : vector<32x128xf32>
    %120 = arith.addf %114, %119 : vector<32x128xf32>
    %121 = vector.extract_strided_slice %1 {offsets = [0, 15], sizes = [32, 1], strides = [1, 1]} : vector<32x40xf32> to vector<32x1xf32>
    %122 = vector.extract_strided_slice %28 {offsets = [15, 0], sizes = [1, 128], strides = [1, 1]} : vector<32x128xf32> to vector<1x128xf32>
    %123 = vector.broadcast %121 : vector<32x1xf32> to vector<32x128xf32>
    %124 = vector.broadcast %122 : vector<1x128xf32> to vector<32x128xf32>
    %125 = arith.mulf %123, %124 : vector<32x128xf32>
    %126 = arith.addf %120, %125 : vector<32x128xf32>
    %127 = vector.extract_strided_slice %1 {offsets = [0, 16], sizes = [32, 1], strides = [1, 1]} : vector<32x40xf32> to vector<32x1xf32>
    %128 = vector.extract_strided_slice %28 {offsets = [16, 0], sizes = [1, 128], strides = [1, 1]} : vector<32x128xf32> to vector<1x128xf32>
    %129 = vector.broadcast %127 : vector<32x1xf32> to vector<32x128xf32>
    %130 = vector.broadcast %128 : vector<1x128xf32> to vector<32x128xf32>
    %131 = arith.mulf %129, %130 : vector<32x128xf32>
    %132 = arith.addf %126, %131 : vector<32x128xf32>
    %133 = vector.extract_strided_slice %1 {offsets = [0, 17], sizes = [32, 1], strides = [1, 1]} : vector<32x40xf32> to vector<32x1xf32>
    %134 = vector.extract_strided_slice %28 {offsets = [17, 0], sizes = [1, 128], strides = [1, 1]} : vector<32x128xf32> to vector<1x128xf32>
    %135 = vector.broadcast %133 : vector<32x1xf32> to vector<32x128xf32>
    %136 = vector.broadcast %134 : vector<1x128xf32> to vector<32x128xf32>
    %137 = arith.mulf %135, %136 : vector<32x128xf32>
    %138 = arith.addf %132, %137 : vector<32x128xf32>
    %139 = vector.extract_strided_slice %1 {offsets = [0, 18], sizes = [32, 1], strides = [1, 1]} : vector<32x40xf32> to vector<32x1xf32>
    %140 = vector.extract_strided_slice %28 {offsets = [18, 0], sizes = [1, 128], strides = [1, 1]} : vector<32x128xf32> to vector<1x128xf32>
    %141 = vector.broadcast %139 : vector<32x1xf32> to vector<32x128xf32>
    %142 = vector.broadcast %140 : vector<1x128xf32> to vector<32x128xf32>
    %143 = arith.mulf %141, %142 : vector<32x128xf32>
    %144 = arith.addf %138, %143 : vector<32x128xf32>
    %145 = vector.extract_strided_slice %1 {offsets = [0, 19], sizes = [32, 1], strides = [1, 1]} : vector<32x40xf32> to vector<32x1xf32>
    %146 = vector.extract_strided_slice %28 {offsets = [19, 0], sizes = [1, 128], strides = [1, 1]} : vector<32x128xf32> to vector<1x128xf32>
    %147 = vector.broadcast %145 : vector<32x1xf32> to vector<32x128xf32>
    %148 = vector.broadcast %146 : vector<1x128xf32> to vector<32x128xf32>
    %149 = arith.mulf %147, %148 : vector<32x128xf32>
    %150 = arith.addf %144, %149 : vector<32x128xf32>
    %151 = vector.extract_strided_slice %1 {offsets = [0, 20], sizes = [32, 1], strides = [1, 1]} : vector<32x40xf32> to vector<32x1xf32>
    %152 = vector.extract_strided_slice %28 {offsets = [20, 0], sizes = [1, 128], strides = [1, 1]} : vector<32x128xf32> to vector<1x128xf32>
    %153 = vector.broadcast %151 : vector<32x1xf32> to vector<32x128xf32>
    %154 = vector.broadcast %152 : vector<1x128xf32> to vector<32x128xf32>
    %155 = arith.mulf %153, %154 : vector<32x128xf32>
    %156 = arith.addf %150, %155 : vector<32x128xf32>
    %157 = vector.extract_strided_slice %1 {offsets = [0, 21], sizes = [32, 1], strides = [1, 1]} : vector<32x40xf32> to vector<32x1xf32>
    %158 = vector.extract_strided_slice %28 {offsets = [21, 0], sizes = [1, 128], strides = [1, 1]} : vector<32x128xf32> to vector<1x128xf32>
    %159 = vector.broadcast %157 : vector<32x1xf32> to vector<32x128xf32>
    %160 = vector.broadcast %158 : vector<1x128xf32> to vector<32x128xf32>
    %161 = arith.mulf %159, %160 : vector<32x128xf32>
    %162 = arith.addf %156, %161 : vector<32x128xf32>
    %163 = vector.extract_strided_slice %1 {offsets = [0, 22], sizes = [32, 1], strides = [1, 1]} : vector<32x40xf32> to vector<32x1xf32>
    %164 = vector.extract_strided_slice %28 {offsets = [22, 0], sizes = [1, 128], strides = [1, 1]} : vector<32x128xf32> to vector<1x128xf32>
    %165 = vector.broadcast %163 : vector<32x1xf32> to vector<32x128xf32>
    %166 = vector.broadcast %164 : vector<1x128xf32> to vector<32x128xf32>
    %167 = arith.mulf %165, %166 : vector<32x128xf32>
    %168 = arith.addf %162, %167 : vector<32x128xf32>
    %169 = vector.extract_strided_slice %1 {offsets = [0, 23], sizes = [32, 1], strides = [1, 1]} : vector<32x40xf32> to vector<32x1xf32>
    %170 = vector.extract_strided_slice %28 {offsets = [23, 0], sizes = [1, 128], strides = [1, 1]} : vector<32x128xf32> to vector<1x128xf32>
    %171 = vector.broadcast %169 : vector<32x1xf32> to vector<32x128xf32>
    %172 = vector.broadcast %170 : vector<1x128xf32> to vector<32x128xf32>
    %173 = arith.mulf %171, %172 : vector<32x128xf32>
    %174 = arith.addf %168, %173 : vector<32x128xf32>
    %175 = vector.extract_strided_slice %1 {offsets = [0, 24], sizes = [32, 1], strides = [1, 1]} : vector<32x40xf32> to vector<32x1xf32>
    %176 = vector.extract_strided_slice %28 {offsets = [24, 0], sizes = [1, 128], strides = [1, 1]} : vector<32x128xf32> to vector<1x128xf32>
    %177 = vector.broadcast %175 : vector<32x1xf32> to vector<32x128xf32>
    %178 = vector.broadcast %176 : vector<1x128xf32> to vector<32x128xf32>
    %179 = arith.mulf %177, %178 : vector<32x128xf32>
    %180 = arith.addf %174, %179 : vector<32x128xf32>
    %181 = vector.extract_strided_slice %1 {offsets = [0, 25], sizes = [32, 1], strides = [1, 1]} : vector<32x40xf32> to vector<32x1xf32>
    %182 = vector.extract_strided_slice %28 {offsets = [25, 0], sizes = [1, 128], strides = [1, 1]} : vector<32x128xf32> to vector<1x128xf32>
    %183 = vector.broadcast %181 : vector<32x1xf32> to vector<32x128xf32>
    %184 = vector.broadcast %182 : vector<1x128xf32> to vector<32x128xf32>
    %185 = arith.mulf %183, %184 : vector<32x128xf32>
    %186 = arith.addf %180, %185 : vector<32x128xf32>
    %187 = vector.extract_strided_slice %1 {offsets = [0, 26], sizes = [32, 1], strides = [1, 1]} : vector<32x40xf32> to vector<32x1xf32>
    %188 = vector.extract_strided_slice %28 {offsets = [26, 0], sizes = [1, 128], strides = [1, 1]} : vector<32x128xf32> to vector<1x128xf32>
    %189 = vector.broadcast %187 : vector<32x1xf32> to vector<32x128xf32>
    %190 = vector.broadcast %188 : vector<1x128xf32> to vector<32x128xf32>
    %191 = arith.mulf %189, %190 : vector<32x128xf32>
    %192 = arith.addf %186, %191 : vector<32x128xf32>
    %193 = vector.extract_strided_slice %1 {offsets = [0, 27], sizes = [32, 1], strides = [1, 1]} : vector<32x40xf32> to vector<32x1xf32>
    %194 = vector.extract_strided_slice %28 {offsets = [27, 0], sizes = [1, 128], strides = [1, 1]} : vector<32x128xf32> to vector<1x128xf32>
    %195 = vector.broadcast %193 : vector<32x1xf32> to vector<32x128xf32>
    %196 = vector.broadcast %194 : vector<1x128xf32> to vector<32x128xf32>
    %197 = arith.mulf %195, %196 : vector<32x128xf32>
    %198 = arith.addf %192, %197 : vector<32x128xf32>
    %199 = vector.extract_strided_slice %1 {offsets = [0, 28], sizes = [32, 1], strides = [1, 1]} : vector<32x40xf32> to vector<32x1xf32>
    %200 = vector.extract_strided_slice %28 {offsets = [28, 0], sizes = [1, 128], strides = [1, 1]} : vector<32x128xf32> to vector<1x128xf32>
    %201 = vector.broadcast %199 : vector<32x1xf32> to vector<32x128xf32>
    %202 = vector.broadcast %200 : vector<1x128xf32> to vector<32x128xf32>
    %203 = arith.mulf %201, %202 : vector<32x128xf32>
    %204 = arith.addf %198, %203 : vector<32x128xf32>
    %205 = vector.extract_strided_slice %1 {offsets = [0, 29], sizes = [32, 1], strides = [1, 1]} : vector<32x40xf32> to vector<32x1xf32>
    %206 = vector.extract_strided_slice %28 {offsets = [29, 0], sizes = [1, 128], strides = [1, 1]} : vector<32x128xf32> to vector<1x128xf32>
    %207 = vector.broadcast %205 : vector<32x1xf32> to vector<32x128xf32>
    %208 = vector.broadcast %206 : vector<1x128xf32> to vector<32x128xf32>
    %209 = arith.mulf %207, %208 : vector<32x128xf32>
    %210 = arith.addf %204, %209 : vector<32x128xf32>
    %211 = vector.extract_strided_slice %1 {offsets = [0, 30], sizes = [32, 1], strides = [1, 1]} : vector<32x40xf32> to vector<32x1xf32>
    %212 = vector.extract_strided_slice %28 {offsets = [30, 0], sizes = [1, 128], strides = [1, 1]} : vector<32x128xf32> to vector<1x128xf32>
    %213 = vector.broadcast %211 : vector<32x1xf32> to vector<32x128xf32>
    %214 = vector.broadcast %212 : vector<1x128xf32> to vector<32x128xf32>
    %215 = arith.mulf %213, %214 : vector<32x128xf32>
    %216 = arith.addf %210, %215 : vector<32x128xf32>
    %217 = vector.extract_strided_slice %1 {offsets = [0, 31], sizes = [32, 1], strides = [1, 1]} : vector<32x40xf32> to vector<32x1xf32>
    %218 = vector.extract_strided_slice %28 {offsets = [31, 0], sizes = [1, 128], strides = [1, 1]} : vector<32x128xf32> to vector<1x128xf32>
    %219 = vector.broadcast %217 : vector<32x1xf32> to vector<32x128xf32>
    %220 = vector.broadcast %218 : vector<1x128xf32> to vector<32x128xf32>
    %221 = arith.mulf %219, %220 : vector<32x128xf32>
    %222 = arith.addf %216, %221 : vector<32x128xf32>
    %cst_4 = arith.constant 0.000000e+00 : f32
    %223 = vector.broadcast %cst_4 : f32 to vector<32x128xf32>
    %224 = arith.maximumf %222, %223 : vector<32x128xf32>
    %225 = vector.extract_strided_slice %1 {offsets = [0, 38], sizes = [32, 1], strides = [1, 1]} : vector<32x40xf32> to vector<32x1xf32>
    %226 = vector.broadcast %225 : vector<32x1xf32> to vector<32x128xf32>
    %227 = arith.mulf %224, %226 : vector<32x128xf32>
    %cst_5 = arith.constant dense<0.000000e+00> : vector<128xf32>
    %228 = vector.multi_reduction <add>, %227, %cst_5 [0] : vector<32x128xf32> to vector<128xf32>
    %229 = vector.shape_cast %228 : vector<128xf32> to vector<1x128xf32>
    %230 = vector.extract_strided_slice %1 {offsets = [0, 39], sizes = [1, 1], strides = [1, 1]} : vector<32x40xf32> to vector<1x1xf32>
    %231 = vector.broadcast %230 : vector<1x1xf32> to vector<1x128xf32>
    %232 = arith.addf %229, %231 : vector<1x128xf32>
    %c0_6 = arith.constant 0 : index
    %c0_7 = arith.constant 0 : index
    %233 = vector.load %arg3[%c0_6, %c0_7] : memref<1x128xf32, #tpu.memory_space<vmem>>, vector<1x128xf32>
    tpu.vector_store %arg3[%c0_6, %c0_7], %232 {strides = array<i32>} : memref<1x128xf32, #tpu.memory_space<vmem>>, vector<1x128xf32>,
    return
  }
  func.func @transform_0(%arg0: i32) -> (i32, i32) {
    %c0_i32 = arith.constant 0 : i32
    %c0_i32_0 = arith.constant 0 : i32
    return %c0_i32, %arg0 : i32, i32
  }
  func.func @transform_1(%arg0: i32) -> (i32, i32) {
    %c0_i32 = arith.constant 0 : i32
    %c0_i32_0 = arith.constant 0 : i32
    %c0_i32_1 = arith.constant 0 : i32
    return %c0_i32, %c0_i32_0 : i32, i32
  }
  func.func @transform_2(%arg0: i32) -> (i32, i32) {
    %c0_i32 = arith.constant 0 : i32
    %c0_i32_0 = arith.constant 0 : i32
    return %c0_i32, %arg0 : i32, i32
  }
}

</mosaic_0001>

<bundles_post_ra>
// kernel: tpu_custom_call.1
= control target key start
LH: loop header
LB: loop body
LE: loop exit
PB: predicated region body
PF: predicated region fallthrough
CT: control target
= control target key end

     0   :  { %7 = vsyncpa [#allocation3], 0  ;;  %s1851_s0 = inlined_call_operand.hbm [shape: f32[3,128], index: 0, kind: input, shape index: {}]   ;;  %s1852_s1 = inlined_call_operand.hbm [shape: f32[32,40], index: 1, kind: input, shape index: {}]   ;;  %s1853_s2 = inlined_call_operand.hbm [shape: f32[1,128], index: 2, kind: output, shape index: {}]  }
   0x1   :  { %8 = vsyncpa [#allocation6], 0 }
   0x2   :  { %9 = vsyncpa [#allocation4], 0  ;;  %s15_s11 = sshll.u32 %s1851_s0, 4  ;;  %s1280_s12 = smov [#allocation2]   ;;  %s16_s11 = int_to_ptr.hbm [resolvable:$true] %s15_s11 }
   0x3   :  { %s17_s13 = sshll.u32 %s1280_s12, 4  ;;  %s25_s16 = sshll.u32 %s1852_s1, 4  ;;  %s18_s13 = int_to_ptr.vmem [resolvable:$true] %s17_s13  ;;  %s26_s16 = int_to_ptr.hbm [resolvable:$true] %s25_s16 }
   0x4   :  { %20 = dma.hbm_to_vmem [thread:$0]  %s16_s11, 64, %s18_s13, [#allocation3]  }
   0x5   :  { %s1281_s17 = smov [#allocation5]   ;;  %s1282_s19 = smov 128  }
   0x6   :  { %s27_s18 = sshll.u32 %s1281_s17, 4  ;;  %s1283_s20 = smov 8   ;;  %s28_s18 = int_to_ptr.vmem [resolvable:$true] %s27_s18 }
   0x7   :  { %33 = dma.hbm_to_vmem [thread:$0]  %s26_s16, 512, %s28_s18, [#allocation6], %s1282_s19, %s1282_s19, %s1283_s20  }
   0x8   :  { %1274 = dma.done.wait [#allocation3], 64  }
   0x9   :  { %1275 = vsyncadd [#allocation3], 4294967232 }
   0xa   :  { %1276 = dma.done.wait [#allocation6], 512  }
   0xb   :  { %1277 = vsyncadd [#allocation6], 4294966784  ;;  %v1284_v0 = vmov 34   ;;  %v1285_v1 = vmov 32   ;;  %v1346_v2 = vld [vmem:[#allocation5] sm:$0xff]  ;;  %v1348_v3 = vld [vmem:[#allocation5 + $0x10] sm:$0xff] }
   0xc   :  { %1090 = vset.pattern.permute.xlu2 %v1284_v0  ;;  %1089 = vset.pattern.permute.xlu1 %v1285_v1  ;;  %v1353_v4 = vld [vmem:[#allocation5 + $0x8] sm:$0xff]  ;;  %v1355_v5 = vld [vmem:[#allocation5 + $0x18] sm:$0xff]  ;;  %v1286_v6 = vmov 33   ;;  %v1287_v7 = vmov 35   ;;  %v1288_v8 = vmov 36   ;;  %v1289_v9 = vmov 0  }
   0xd   :  { %1088 = vset.pattern.permute.xlu0 %v1285_v1  ;;  %59 = vperm.xlu1 %1089, %v1348_v3   ;;  %v1290_v10 = vmov 37   ;;  %v1291_v11 = vmov 1   ;;  %v1292_v12 = vmov 3   ;;  %v1293_v13 = vmov 4   ;;  %v42_v33 = vld [vmem:[#allocation2] sm:$0x7] }
   0xe   :  { %73 = vperm.xlu2 %1090, %v1346_v2   ;;  %49 = vperm.xlu0 %1088, %v1346_v2   ;;  %v1294_v14 = vmov 5   ;;  %v1295_v17 = vmov 6   ;;  %v1296_v18 = vmov 2   ;;  %v1297_v19 = vmov 8   ;;  %s1324_s0 = smov [#allocation7]   ;;  %s1032_s23 = sshll.u32 %s1853_s2, 4  ;;  %s1033_s23 = int_to_ptr.hbm [resolvable:$true] %s1032_s23 }
   0xf   :  { %v1298_v24 = vmov 9   ;;  %v1299_v28 = vmov 10   ;;  %v1300_v32 = vmov 11   ;;  %v1428_v34 = vperm.slane %v42_v33, 0  ;;  %s1030_s1 = sshll.u32 %s1324_s0, 4  ;;  %s1031_s1 = int_to_ptr.vmem [resolvable:$true] %s1030_s1 }
  0x10   :  { %v1434_v37 = vperm.slane %v42_v33, 1  ;;  %v1301_v40 = vmov 13   ;;  %v1443_v43 = vperm.slane %v42_v33, 2  ;;  %v1302_v49 = vmov 14  }
  0x11   :  { %v1303_v59 = vmov 15   ;;  %v1304_v63 = vmov 16   ;;  %v1307_v33 = vmov 19  }
  0x15   :  { %64 = vperm.xlu1 %1089, %v1355_v5  }
  0x16   :  { %77 = vperm.xlu2 %1090, %v1353_v4   ;;  %54 = vperm.xlu0 %1088, %v1353_v4  }
  0x1d   :  { %1092 = vset.pattern.permute.xlu1 %v1284_v0 }
  0x1e   :  { %1093 = vset.pattern.permute.xlu2 %v1286_v6  ;;  %1091 = vset.pattern.permute.xlu0 %v1284_v0  ;;  %v1305_v0 = vmov 7  }
  0x1f   :  { %85 = vperm.xlu1 %1092, %v1355_v5   ;;  %93 = vperm.xlu2 %1093, %v1346_v2  }
  0x20   :  { %81 = vperm.xlu0 %1091, %v1348_v3  }
  0x27   :  { %1094 = vset.pattern.permute.xlu1 %v1286_v6  ;;  %101 = vperm.xlu2 %1093, %v1348_v3  }
  0x28   :  { %1095 = vset.pattern.permute.xlu0 %v1286_v6  ;;  %97 = vperm.xlu1 %1094, %v1353_v4  }
  0x29   :  { %105 = vperm.xlu0 %1095, %v1355_v5  }
  0x2f   :  { %1097 = vset.pattern.permute.xlu2 %v1287_v7 }
  0x30   :  { %1096 = vset.pattern.permute.xlu1 %v1287_v7  ;;  %122 = vperm.xlu2 %1097, %v1353_v4  }
  0x31   :  { %1098 = vset.pattern.permute.xlu0 %v1288_v8  ;;  %118 = vperm.xlu1 %1096, %v1346_v2  }
  0x32   :  { %139 = vperm.xlu0 %1098, %v1346_v2  }
  0x38   :  { %130 = vperm.xlu2 %1097, %v1355_v5  }
  0x39   :  { %126 = vperm.xlu1 %1096, %v1348_v3  }
  0x3a   :  { %1102 = vset.pattern.permute.xlu0 %v1289_v9 }
  0x3b   :  { %175 = vperm.xlu0 %1102, %v1353_v4  }
  0x40   :  { %1100 = vset.pattern.permute.xlu2 %v1288_v8 }
  0x41   :  { %1099 = vset.pattern.permute.xlu1 %v1288_v8  ;;  %147 = vperm.xlu2 %1100, %v1348_v3  }
  0x42   :  { %143 = vperm.xlu1 %1099, %v1353_v4  }
  0x43   :  { %1106 = vset.pattern.permute.xlu0 %v1290_v10 }
  0x44   :  { %200 = vperm.xlu0 %1106, %v1348_v3  }
  0x49   :  { %1101 = vset.pattern.permute.xlu2 %v1289_v9 }
  0x4a   :  { %151 = vperm.xlu1 %1099, %v1355_v5   ;;  %171 = vperm.xlu2 %1101, %v1346_v2  }
  0x4c   :  { %1109 = vset.pattern.permute.xlu0 %v1291_v11 }
  0x4d   :  { %224 = vperm.xlu0 %1109, %v1355_v5  }
  0x52   :  { %1103 = vset.pattern.permute.xlu1 %v1289_v9  ;;  %183 = vperm.xlu2 %1101, %v1355_v5  }
  0x53   :  { %179 = vperm.xlu1 %1103, %v1348_v3  }
  0x55   :  { %1112 = vset.pattern.permute.xlu0 %v1292_v12 }
  0x56   :  { %262 = vperm.xlu0 %1112, %v1346_v2  }
  0x5a   :  { %1105 = vset.pattern.permute.xlu2 %v1290_v10 }
  0x5b   :  { %1104 = vset.pattern.permute.xlu1 %v1290_v10  ;;  %196 = vperm.xlu2 %1105, %v1353_v4   ;;  %v1306_v10 = vmov 18  }
  0x5c   :  { %192 = vperm.xlu1 %1104, %v1346_v2  }
  0x5e   :  { %1116 = vset.pattern.permute.xlu0 %v1293_v13 }
  0x5f   :  { %291 = vperm.xlu0 %1116, %v1353_v4  }
  0x63   :  { %1107 = vset.pattern.permute.xlu2 %v1291_v11 }
  0x64   :  { %204 = vperm.xlu1 %1104, %v1355_v5   ;;  %212 = vperm.xlu2 %1107, %v1346_v2  }
  0x67   :  { %1120 = vset.pattern.permute.xlu0 %v1294_v14 }
  0x68   :  { %v74_v15 = vpop.permute.xlu2 %73  ;;  %320 = vperm.xlu0 %1120, %v1348_v3  }
  0x6c   :  { %1108 = vset.pattern.permute.xlu1 %v1291_v11  ;;  %220 = vperm.xlu2 %1107, %v1348_v3  }
  0x6d   :  { %216 = vperm.xlu1 %1108, %v1353_v4  }
  0x70   :  { %v1390_v16 = vpop.permute.xlu2 %77  ;;  %1123 = vset.pattern.permute.xlu0 %v1295_v17 }
  0x71   :  { %349 = vperm.xlu0 %1123, %v1355_v5  }
  0x74   :  { %1111 = vset.pattern.permute.xlu2 %v1296_v18 }
  0x75   :  { %1110 = vset.pattern.permute.xlu1 %v1296_v18  ;;  %241 = vperm.xlu2 %1111, %v1353_v4  }
  0x76   :  { %237 = vperm.xlu1 %1110, %v1346_v2  }
  0x79   :  { %1126 = vset.pattern.permute.xlu0 %v1297_v19  ;;  %v94_v20 = vpop.permute.xlu2 %93 }
  0x7a   :  { %387 = vperm.xlu0 %1126, %v1346_v2   ;;  %v109_v41 = vmul.f32 %v1434_v37, %v94_v20 }
  0x7d   :  { %249 = vperm.xlu2 %1111, %v1355_v5  }
  0x7e   :  { %245 = vperm.xlu1 %1110, %v1348_v3  }
  0x7f   :  { %v1400_v21 = vpop.permute.xlu1 %59 }
  0x80   :  { %v50_v22 = vpop.permute.xlu0 %49 }
  0x81   :  { %v1402_v23 = vpop.permute.xlu2 %101  ;;  %v68_v38 = vmul.f32 %v1428_v34, %v50_v22 }
  0x82   :  { %1130 = vset.pattern.permute.xlu0 %v1298_v24 }
  0x83   :  { %416 = vperm.xlu0 %1130, %v1353_v4   ;;  %v88_v42 = vadd.f32 %v74_v15, %v68_v38 }
  0x85   :  { %1114 = vset.pattern.permute.xlu2 %v1292_v12  ;;  %v113_v45 = vadd.f32 %v109_v41, %v88_v42 }
  0x86   :  { %1113 = vset.pattern.permute.xlu1 %v1292_v12  ;;  %270 = vperm.xlu2 %1114, %v1348_v3  }
  0x87   :  { %266 = vperm.xlu1 %1113, %v1353_v4   ;;  %v1408_v25 = vpop.permute.xlu1 %64  ;;  %v158_v51 = vmax.f32 %v113_v45, 0.0 }
  0x88   :  { %v1410_v26 = vpop.permute.xlu0 %54 }
  0x8a   :  { %v1412_v27 = vpop.permute.xlu2 %122 }
  0x8b   :  { %1134 = vset.pattern.permute.xlu0 %v1299_v28 }
  0x8c   :  { %445 = vperm.xlu0 %1134, %v1348_v3  }
  0x8e   :  { %1115 = vset.pattern.permute.xlu2 %v1293_v13 }
  0x8f   :  { %274 = vperm.xlu1 %1113, %v1355_v5   ;;  %287 = vperm.xlu2 %1115, %v1346_v2  }
  0x91   :  { %v1418_v29 = vpop.permute.xlu1 %85 }
  0x92   :  { %v1420_v30 = vpop.permute.xlu0 %81  ;;  %v1422_v31 = vpop.permute.xlu2 %130 }
  0x94   :  { %1137 = vset.pattern.permute.xlu0 %v1300_v32 }
  0x95   :  { %474 = vperm.xlu0 %1137, %v1355_v5  }
  0x97   :  { %1117 = vset.pattern.permute.xlu1 %v1293_v13  ;;  %299 = vperm.xlu2 %1115, %v1355_v5  }
  0x98   :  { %295 = vperm.xlu1 %1117, %v1348_v3  }
  0x9a   :  { %v1430_v35 = vpop.permute.xlu1 %97 }
  0x9b   :  { %v1432_v36 = vpop.permute.xlu2 %147  ;;  %v1437_v39 = vpop.permute.xlu0 %105 }
  0x9d   :  { %1140 = vset.pattern.permute.xlu0 %v1301_v40 }
  0x9e   :  { %512 = vperm.xlu0 %1140, %v1346_v2  }
  0x9f   :  { %1119 = vset.pattern.permute.xlu2 %v1294_v14 }
  0xa0   :  { %1118 = vset.pattern.permute.xlu1 %v1294_v14  ;;  %316 = vperm.xlu2 %1119, %v1353_v4  }
  0xa1   :  { %312 = vperm.xlu1 %1118, %v1346_v2  }
  0xa3   :  { %v119_v44 = vpop.permute.xlu1 %118 }
  0xa4   :  { %v134_v46 = vmul.f32 %v1443_v43, %v119_v44  ;;  %v1449_v47 = vpop.permute.xlu2 %171  ;;  %v140_v48 = vpop.permute.xlu0 %139 }
  0xa6   :  { %1144 = vset.pattern.permute.xlu0 %v1302_v49  ;;  %v154_v50 = vadd.f32 %v140_v48, %v134_v46  ;;  %v1308_v46 = vmov 20  }
  0xa7   :  { %541 = vperm.xlu0 %1144, %v1353_v4  }
  0xa8   :  { %v162_v52 = vmax.f32 %v154_v50, 0.0  ;;  %1121 = vset.pattern.permute.xlu2 %v1295_v17 }
  0xa9   :  { %324 = vperm.xlu1 %1118, %v1355_v5   ;;  %337 = vperm.xlu2 %1121, %v1346_v2  }
  0xaa   :  { %v1456_v53 = vadd.f32 %v162_v52, %v158_v51 }
  0xab   :  { %v1458_v54 = vpop.permute.xlu1 %126 }
  0xac   :  { %v184_v55 = vpop.permute.xlu2 %183  ;;  %v1461_v56 = vperm.slane %v1456_v53, 0  ;;  %v1484_v7 = vperm.slane %v1456_v53, 1  ;;  %v1494_v15 = vperm.slane %v1456_v53, 3  ;;  %v1508_v42 = vperm.slane %v1456_v53, 4 }
  0xad   :  { %v176_v57 = vpop.permute.xlu0 %175  ;;  %v1520_v48 = vperm.slane %v1456_v53, 2 }
  0xae   :  { %v1464_v58 = vmul.f32 %v1461_v56, %v176_v57 }
  0xaf   :  { %1148 = vset.pattern.permute.xlu0 %v1303_v59 }
  0xb0   :  { %570 = vperm.xlu0 %1148, %v1348_v3  }
  0xb1   :  { %1122 = vset.pattern.permute.xlu1 %v1295_v17  ;;  %345 = vperm.xlu2 %1121, %v1348_v3  }
  0xb2   :  { %341 = vperm.xlu1 %1122, %v1353_v4  }
  0xb4   :  { %v1471_v60 = vpop.permute.xlu1 %143 }
  0xb5   :  { %v1473_v61 = vpop.permute.xlu2 %196 }
  0xb6   :  { %v201_v62 = vpop.permute.xlu0 %200 }
  0xb8   :  { %1151 = vset.pattern.permute.xlu0 %v1304_v63 }
  0xb9   :  { %599 = vperm.xlu0 %1151, %v1355_v5   ;;  %1125 = vset.pattern.permute.xlu2 %v1305_v0 }
  0xba   :  { %1124 = vset.pattern.permute.xlu1 %v1305_v0  ;;  %366 = vperm.xlu2 %1125, %v1353_v4   ;;  %v1524_v0 = vperm.slane %v1456_v53, 5 }
  0xbb   :  { %362 = vperm.xlu1 %1124, %v1346_v2  }
  0xbc   :  { %v1479_v1 = vpop.permute.xlu1 %151 }
  0xbe   :  { %v1481_v6 = vpop.permute.xlu2 %212 }
  0xbf   :  { %v225_v8 = vpop.permute.xlu0 %224 }
  0xc0   :  { %v231_v9 = vmul.f32 %v1484_v7, %v225_v8 }
  0xc1   :  { %1154 = vset.pattern.permute.xlu0 %v1306_v10 }
  0xc2   :  { %637 = vperm.xlu0 %1154, %v1346_v2   ;;  %374 = vperm.xlu2 %1125, %v1355_v5  }
  0xc3   :  { %370 = vperm.xlu1 %1124, %v1348_v3  }
  0xc5   :  { %v180_v11 = vpop.permute.xlu1 %179 }
  0xc6   :  { %v189_v12 = vmul.f32 %v1461_v56, %v180_v11  ;;  %v221_v13 = vpop.permute.xlu2 %220 }
  0xc7   :  { %v230_v14 = vmul.f32 %v1484_v7, %v221_v13  ;;  %v1309_v13 = vmov 21  }
  0xc8   :  { %v209_v17 = vadd.f32 %v201_v62, %v189_v12  ;;  %v263_v18 = vpop.permute.xlu0 %262 }
  0xc9   :  { %v1497_v20 = vmul.f32 %v1494_v15, %v263_v18 }
  0xca   :  { %v1499_v22 = vadd.f32 %v230_v14, %v209_v17  ;;  %1158 = vset.pattern.permute.xlu0 %v1307_v33  ;;  %1128 = vset.pattern.permute.xlu2 %v1297_v19  ;;  %v135_v14 = vmul.f32 %v1443_v43, %v1412_v27 }
  0xcb   :  { %666 = vperm.xlu0 %1158, %v1353_v4   ;;  %1127 = vset.pattern.permute.xlu1 %v1297_v19  ;;  %v190_v19 = vmul.f32 %v1461_v56, %v184_v55  ;;  %v69_v55 = vmul.f32 %v1428_v34, %v1410_v26 }
  0xcc   :  { %395 = vperm.xlu2 %1128, %v1348_v3   ;;  %391 = vperm.xlu1 %1127, %v1353_v4   ;;  %v155_v17 = vadd.f32 %v1471_v60, %v135_v14  ;;  %v228_v14 = vmul.f32 %v1484_v7, %v1481_v6 }
  0xcd   :  { %v89_v26 = vadd.f32 %v1390_v16, %v69_v55  ;;  %v187_v16 = vmul.f32 %v1461_v56, %v1449_v47  ;;  %v1310_v55 = vmov 23  }
  0xce   :  { %v193_v38 = vpop.permute.xlu1 %192 }
  0xcf   :  { %v242_v41 = vpop.permute.xlu2 %241 }
  0xd1   :  { %v292_v44 = vpop.permute.xlu0 %291 }
  0xd2   :  { %v1511_v45 = vmul.f32 %v1508_v42, %v292_v44  ;;  %v208_v44 = vadd.f32 %v1473_v61, %v1464_v58 }
  0xd3   :  { %1162 = vset.pattern.permute.xlu0 %v1308_v46 }
  0xd4   :  { %1129 = vset.pattern.permute.xlu2 %v1298_v24  ;;  %695 = vperm.xlu0 %1162, %v1348_v3  }
  0xd5   :  { %399 = vperm.xlu1 %1127, %v1355_v5   ;;  %412 = vperm.xlu2 %1129, %v1346_v2  }
  0xd6   :  { %v205_v50 = vpop.permute.xlu1 %204 }
  0xd7   :  { %v210_v51 = vadd.f32 %v205_v50, %v190_v19  ;;  %v250_v52 = vpop.permute.xlu2 %249  ;;  %v254_v50 = vmul.f32 %v1520_v48, %v242_v41 }
  0xd8   :  { %v256_v57 = vmul.f32 %v1520_v48, %v250_v52  ;;  %v1550_v52 = vperm.slane %v1456_v53, 6 }
  0xd9   :  { %v235_v62 = vadd.f32 %v231_v9, %v210_v51  ;;  %v110_v9 = vmul.f32 %v1434_v37, %v1430_v35 }
  0xda   :  { %v321_v8 = vpop.permute.xlu0 %320 }
  0xdb   :  { %v1528_v11 = vadd.f32 %v256_v57, %v235_v62  ;;  %v1531_v12 = vmul.f32 %v1524_v0, %v321_v8  ;;  %v114_v35 = vadd.f32 %v110_v9, %v89_v26  ;;  %v163_v57 = vmax.f32 %v155_v17, 0.0 }
  0xdc   :  { %1165 = vset.pattern.permute.xlu0 %v1309_v13  ;;  %v207_v8 = vadd.f32 %v193_v38, %v187_v16 }
  0xdd   :  { %1131 = vset.pattern.permute.xlu1 %v1298_v24  ;;  %424 = vperm.xlu2 %1129, %v1355_v5   ;;  %v159_v61 = vmax.f32 %v114_v35, 0.0 }
  0xde   :  { %724 = vperm.xlu0 %1165, %v1355_v5   ;;  %420 = vperm.xlu1 %1131, %v1348_v3   ;;  %v232_v56 = vadd.f32 %v228_v14, %v207_v8  ;;  %v1312_v8 = vmov 25  }
  0xdf   :  { %v217_v18 = vpop.permute.xlu1 %216  ;;  %v1560_v41 = vadd.f32 %v163_v57, %v159_v61 }
  0xe0   :  { %v229_v27 = vmul.f32 %v1484_v7, %v217_v18  ;;  %v271_v19 = vpop.permute.xlu2 %270 }
  0xe1   :  { %v280_v24 = vmul.f32 %v1494_v15, %v271_v19  ;;  %v1587_v57 = vperm.slane %v1560_v41, 1 }
  0xe2   :  { %v233_v51 = vadd.f32 %v229_v27, %v208_v44  ;;  %v1311_v27 = vmov 24  }
  0xe3   :  { %v350_v60 = vpop.permute.xlu0 %349 }
  0xe4   :  { %v1555_v62 = vmul.f32 %v1550_v52, %v350_v60  ;;  %v258_v58 = vadd.f32 %v254_v50, %v233_v51 }
  0xe5   :  { %1133 = vset.pattern.permute.xlu2 %v1299_v28 }
  0xe6   :  { %1168 = vset.pattern.permute.xlu0 %v1310_v55  ;;  %1132 = vset.pattern.permute.xlu1 %v1299_v28  ;;  %v1570_v28 = vperm.slane %v1560_v41, 0 }
  0xe7   :  { %441 = vperm.xlu2 %1133, %v1353_v4   ;;  %762 = vperm.xlu0 %1168, %v1346_v2  }
  0xe8   :  { %437 = vperm.xlu1 %1132, %v1346_v2   ;;  %v238_v47 = vpop.permute.xlu1 %237 }
  0xe9   :  { %v253_v38 = vmul.f32 %v1520_v48, %v238_v47  ;;  %v288_v9 = vpop.permute.xlu2 %287 }
  0xea   :  { %v303_v26 = vmul.f32 %v1508_v42, %v288_v9 }
  0xeb   :  { %v257_v17 = vadd.f32 %v253_v38, %v232_v56  ;;  %v1600_v56 = vperm.slane %v1560_v41, 2 }
  0xec   :  { %v388_v18 = vpop.permute.xlu0 %387 }
  0xed   :  { %v282_v6 = vadd.f32 %v1497_v20, %v257_v17  ;;  %v1574_v7 = vmul.f32 %v1570_v28, %v388_v18  ;;  %v1313_v17 = vmov 12  }
  0xef   :  { %v1576_v44 = vadd.f32 %v303_v26, %v282_v6  ;;  %1135 = vset.pattern.permute.xlu2 %v1300_v32  ;;  %1172 = vset.pattern.permute.xlu0 %v1311_v27  ;;  %v1314_v6 = vmov 26  }
  0xf0   :  { %449 = vperm.xlu1 %1132, %v1355_v5   ;;  %462 = vperm.xlu2 %1135, %v1346_v2   ;;  %v246_v19 = vpop.permute.xlu1 %245 }
  0xf1   :  { %791 = vperm.xlu0 %1172, %v1353_v4   ;;  %v255_v35 = vmul.f32 %v1520_v48, %v246_v19  ;;  %v300_v20 = vpop.permute.xlu2 %299 }
  0xf2   :  { %v306_v50 = vmul.f32 %v1508_v42, %v300_v20  ;;  %v1616_v20 = vperm.slane %v1560_v41, 3 }
  0xf3   :  { %v259_v51 = vadd.f32 %v255_v35, %v1499_v22 }
  0xf5   :  { %v417_v16 = vpop.permute.xlu0 %416  ;;  %v284_v60 = vadd.f32 %v280_v24, %v259_v51 }
  0xf6   :  { %v1590_v61 = vmul.f32 %v1587_v57, %v417_v16 }
  0xf8   :  { %1136 = vset.pattern.permute.xlu1 %v1300_v32  ;;  %470 = vperm.xlu2 %1135, %v1348_v3  }
  0xf9   :  { %1176 = vset.pattern.permute.xlu0 %v1312_v8  ;;  %466 = vperm.xlu1 %1136, %v1353_v4   ;;  %v267_v48 = vpop.permute.xlu1 %266 }
  0xfa   :  { %820 = vperm.xlu0 %1176, %v1348_v3   ;;  %v279_v22 = vmul.f32 %v1494_v15, %v267_v48  ;;  %v317_v14 = vpop.permute.xlu2 %316 }
  0xfb   :  { %v329_v24 = vmul.f32 %v1524_v0, %v317_v14 }
  0xfc   :  { %v283_v47 = vadd.f32 %v279_v22, %v258_v58  ;;  %v1315_v22 = vmov 28  }
  0xfe   :  { %v308_v32 = vadd.f32 %v1511_v45, %v283_v47  ;;  %v446_v38 = vpop.permute.xlu0 %445 }
  0xff   :  { %v1604_v9 = vmul.f32 %v1600_v56, %v446_v38 }
 0x100   :  { %v1606_v26 = vadd.f32 %v329_v24, %v308_v32  ;;  %1139 = vset.pattern.permute.xlu2 %v1313_v17  ;;  %v1629_v32 = vperm.slane %v1560_v41, 5 }
 0x101   :  { %1138 = vset.pattern.permute.xlu1 %v1313_v17  ;;  %491 = vperm.xlu2 %1139, %v1353_v4   ;;  %v275_v18 = vpop.permute.xlu1 %274 }
 0x102   :  { %1179 = vset.pattern.permute.xlu0 %v1314_v6  ;;  %487 = vperm.xlu1 %1138, %v1346_v2   ;;  %v281_v58 = vmul.f32 %v1494_v15, %v275_v18 }
 0x103   :  { %849 = vperm.xlu0 %1179, %v1355_v5   ;;  %v338_v45 = vpop.permute.xlu2 %337 }
 0x104   :  { %v285_v19 = vadd.f32 %v281_v58, %v1528_v11  ;;  %v353_v35 = vmul.f32 %v1550_v52, %v338_v45 }
 0x106   :  { %v310_v51 = vadd.f32 %v306_v50, %v285_v19 }
 0x107   :  { %v475_v16 = vpop.permute.xlu0 %474 }
 0x108   :  { %v1619_v48 = vmul.f32 %v1616_v20, %v475_v16  ;;  %v1649_v16 = vperm.slane %v1560_v41, 6 }
 0x109   :  { %499 = vperm.xlu2 %1139, %v1355_v5  }
 0x10a   :  { %495 = vperm.xlu1 %1138, %v1348_v3   ;;  %v296_v15 = vpop.permute.xlu1 %295 }
 0x10b   :  { %1182 = vset.pattern.permute.xlu0 %v1315_v22  ;;  %v305_v11 = vmul.f32 %v1508_v42, %v296_v15  ;;  %v346_v14 = vpop.permute.xlu2 %345 }
 0x10c   :  { %887 = vperm.xlu0 %1182, %v1346_v2   ;;  %v355_v24 = vmul.f32 %v1550_v52, %v346_v14  ;;  %v136_v14 = vmul.f32 %v1443_v43, %v1458_v54 }
 0x10d   :  { %v309_v50 = vadd.f32 %v305_v11, %v284_v60  ;;  %v1316_v60 = vmov 29  }
 0x10f   :  { %v334_v47 = vadd.f32 %v1531_v12, %v309_v50  ;;  %v1641_v12 = vperm.slane %v1456_v53, 7  ;;  %v70_v53 = vmul.f32 %v1428_v34, %v1400_v21 }
 0x110   :  { %v513_v38 = vpop.permute.xlu0 %512 }
 0x111   :  { %v1631_v17 = vadd.f32 %v355_v24, %v334_v47  ;;  %1142 = vset.pattern.permute.xlu2 %v1301_v40  ;;  %v1635_v18 = vmul.f32 %v1629_v32, %v513_v38  ;;  %v90_v50 = vadd.f32 %v1420_v30, %v70_v53  ;;  %v1317_v38 = vmov 30  }
 0x112   :  { %1141 = vset.pattern.permute.xlu1 %v1301_v40  ;;  %520 = vperm.xlu2 %1142, %v1348_v3  }
 0x113   :  { %516 = vperm.xlu1 %1141, %v1353_v4   ;;  %v313_v42 = vpop.permute.xlu1 %312 }
 0x114   :  { %1186 = vset.pattern.permute.xlu0 %v1316_v60  ;;  %v328_v58 = vmul.f32 %v1524_v0, %v313_v42  ;;  %v367_v45 = vpop.permute.xlu2 %366  ;;  %v156_v42 = vadd.f32 %v1432_v36, %v136_v14 }
 0x115   :  { %916 = vperm.xlu0 %1186, %v1353_v4   ;;  %v379_v19 = vmul.f32 %v1641_v12, %v367_v45 }
 0x116   :  { %v332_v40 = vadd.f32 %v328_v58, %v1576_v44  ;;  %v164_v30 = vmax.f32 %v156_v42, 0.0 }
 0x118   :  { %v357_v15 = vadd.f32 %v353_v35, %v332_v40  ;;  %v111_v35 = vmul.f32 %v1434_v37, %v1402_v23  ;;  %v1671_v23 = vperm.slane %v1560_v41, 7 }
 0x119   :  { %v542_v11 = vpop.permute.xlu0 %541 }
 0x11a   :  { %1143 = vset.pattern.permute.xlu2 %v1302_v49  ;;  %v1657_v24 = vmul.f32 %v1649_v16, %v542_v11  ;;  %v115_v45 = vadd.f32 %v111_v35, %v90_v50 }
 0x11b   :  { %524 = vperm.xlu1 %1141, %v1355_v5   ;;  %537 = vperm.xlu2 %1143, %v1346_v2   ;;  %v325_v44 = vpop.permute.xlu1 %324 }
 0x11c   :  { %v331_v21 = vmul.f32 %v1524_v0, %v325_v44  ;;  %v375_v47 = vpop.permute.xlu2 %374  ;;  %v160_v36 = vmax.f32 %v115_v45, 0.0  ;;  %v1318_v44 = vmov 31  }
 0x11d   :  { %1190 = vset.pattern.permute.xlu0 %v1317_v38  ;;  %v381_v54 = vmul.f32 %v1641_v12, %v375_v47 }
 0x11e   :  { %v335_v58 = vadd.f32 %v331_v21, %v310_v51  ;;  %945 = vperm.xlu0 %1190, %v1348_v3  }
 0x120   :  { %v360_v40 = vadd.f32 %v1555_v62, %v335_v58  ;;  %v1680_v62 = vadd.f32 %v164_v30, %v160_v36 }
 0x122   :  { %v385_v11 = vadd.f32 %v381_v54, %v360_v40  ;;  %v571_v0 = vpop.permute.xlu0 %570  ;;  %v1687_v47 = vperm.slane %v1680_v62, 0 }
 0x123   :  { %1145 = vset.pattern.permute.xlu1 %v1302_v49  ;;  %549 = vperm.xlu2 %1143, %v1355_v5   ;;  %v1676_v53 = vmul.f32 %v1671_v23, %v571_v0 }
 0x124   :  { %545 = vperm.xlu1 %1145, %v1348_v3   ;;  %v342_v51 = vpop.permute.xlu1 %341 }
 0x125   :  { %v354_v14 = vmul.f32 %v1550_v52, %v342_v51 }
 0x126   :  { %1194 = vset.pattern.permute.xlu0 %v1318_v44  ;;  %v396_v35 = vpop.permute.xlu2 %395 }
 0x127   :  { %v358_v50 = vadd.f32 %v354_v14, %v1606_v26  ;;  %974 = vperm.xlu0 %1194, %v1355_v5   ;;  %v405_v49 = vmul.f32 %v1570_v28, %v396_v35 }
 0x129   :  { %v383_v21 = vadd.f32 %v379_v19, %v358_v50 }
 0x12b   :  { %1147 = vset.pattern.permute.xlu2 %v1303_v59  ;;  %v600_v54 = vpop.permute.xlu0 %599 }
 0x12c   :  { %1146 = vset.pattern.permute.xlu1 %v1303_v59  ;;  %566 = vperm.xlu2 %1147, %v1353_v4   ;;  %v1693_v52 = vmul.f32 %v1687_v47, %v600_v54 }
 0x12d   :  { %562 = vperm.xlu1 %1146, %v1346_v2   ;;  %v363_v26 = vpop.permute.xlu1 %362 }
 0x12e   :  { %v378_v42 = vmul.f32 %v1641_v12, %v363_v26 }
 0x12f   :  { %v413_v58 = vpop.permute.xlu2 %412 }
 0x130   :  { %v382_v19 = vadd.f32 %v378_v42, %v357_v15  ;;  %v428_v45 = vmul.f32 %v1587_v57, %v413_v58 }
 0x132   :  { %v407_v40 = vadd.f32 %v1574_v7, %v382_v19 }
 0x134   :  { %v432_v30 = vadd.f32 %v428_v45, %v407_v40  ;;  %1149 = vset.pattern.permute.xlu2 %v1304_v63 }
 0x135   :  { %574 = vperm.xlu1 %1146, %v1355_v5   ;;  %587 = vperm.xlu2 %1149, %v1346_v2   ;;  %v371_v59 = vpop.permute.xlu1 %370 }
 0x136   :  { %v380_v0 = vmul.f32 %v1641_v12, %v371_v59 }
 0x137   :  { %v425_v36 = vpop.permute.xlu2 %424 }
 0x138   :  { %v384_v51 = vadd.f32 %v380_v0, %v1631_v17  ;;  %v431_v14 = vmul.f32 %v1587_v57, %v425_v36  ;;  %v1319_v17 = vmov 17  }
 0x13a   :  { %v409_v15 = vadd.f32 %v405_v49, %v384_v51 }
 0x13d   :  { %1150 = vset.pattern.permute.xlu1 %v1304_v63  ;;  %595 = vperm.xlu2 %1149, %v1348_v3  }
 0x13e   :  { %591 = vperm.xlu1 %1150, %v1353_v4   ;;  %v392_v7 = vpop.permute.xlu1 %391 }
 0x13f   :  { %v404_v35 = vmul.f32 %v1570_v28, %v392_v7 }
 0x141   :  { %v408_v50 = vadd.f32 %v404_v35, %v383_v21  ;;  %v442_v54 = vpop.permute.xlu2 %441 }
 0x142   :  { %v454_v26 = vmul.f32 %v1600_v56, %v442_v54 }
 0x143   :  { %v433_v12 = vadd.f32 %v1590_v61, %v408_v50 }
 0x145   :  { %v458_v42 = vadd.f32 %v454_v26, %v433_v12  ;;  %1153 = vset.pattern.permute.xlu2 %v1319_v17 }
 0x146   :  { %1152 = vset.pattern.permute.xlu1 %v1319_v17  ;;  %616 = vperm.xlu2 %1153, %v1353_v4  }
 0x147   :  { %612 = vperm.xlu1 %1152, %v1346_v2   ;;  %v400_v63 = vpop.permute.xlu1 %399 }
 0x148   :  { %v406_v49 = vmul.f32 %v1570_v28, %v400_v63 }
 0x14a   :  { %v410_v58 = vadd.f32 %v406_v49, %v385_v11  ;;  %v463_v19 = vpop.permute.xlu2 %462 }
 0x14b   :  { %v478_v21 = vmul.f32 %v1616_v20, %v463_v19 }
 0x14c   :  { %v435_v45 = vadd.f32 %v431_v14, %v410_v58  ;;  %v502_v14 = vperm.slane %v1560_v41, 4 }
 0x14e   :  { %624 = vperm.xlu2 %1153, %v1355_v5  }
 0x14f   :  { %620 = vperm.xlu1 %1152, %v1348_v3  }
 0x150   :  { %v421_v61 = vpop.permute.xlu1 %420 }
 0x151   :  { %v430_v40 = vmul.f32 %v1587_v57, %v421_v61 }
 0x152   :  { %v471_v59 = vpop.permute.xlu2 %470 }
 0x153   :  { %v434_v0 = vadd.f32 %v430_v40, %v409_v15  ;;  %v480_v36 = vmul.f32 %v1616_v20, %v471_v59 }
 0x155   :  { %v459_v51 = vadd.f32 %v1604_v9, %v434_v0 }
 0x156   :  { %1156 = vset.pattern.permute.xlu2 %v1306_v10 }
 0x157   :  { %v484_v28 = vadd.f32 %v480_v36, %v459_v51  ;;  %1155 = vset.pattern.permute.xlu1 %v1306_v10  ;;  %645 = vperm.xlu2 %1156, %v1348_v3  }
 0x158   :  { %641 = vperm.xlu1 %1155, %v1353_v4  }
 0x15a   :  { %v438_v11 = vpop.permute.xlu1 %437 }
 0x15b   :  { %v453_v57 = vmul.f32 %v1600_v56, %v438_v11  ;;  %v492_v7 = vpop.permute.xlu2 %491 }
 0x15c   :  { %v504_v15 = vmul.f32 %v502_v14, %v492_v7 }
 0x15d   :  { %v457_v35 = vadd.f32 %v453_v57, %v432_v30 }
 0x15f   :  { %1157 = vset.pattern.permute.xlu2 %v1307_v33  ;;  %v482_v9 = vadd.f32 %v478_v21, %v457_v35  ;;  %v1320_v35 = vmov 22  }
 0x160   :  { %649 = vperm.xlu1 %1155, %v1355_v5   ;;  %662 = vperm.xlu2 %1157, %v1346_v2  }
 0x162   :  { %v450_v10 = vpop.permute.xlu1 %449 }
 0x163   :  { %v456_v50 = vmul.f32 %v1600_v56, %v450_v10  ;;  %v500_v54 = vpop.permute.xlu2 %499 }
 0x164   :  { %v506_v26 = vmul.f32 %v502_v14, %v500_v54 }
 0x165   :  { %v460_v12 = vadd.f32 %v456_v50, %v435_v45 }
 0x167   :  { %v485_v41 = vadd.f32 %v1619_v48, %v460_v12 }
 0x168   :  { %1159 = vset.pattern.permute.xlu1 %v1307_v33  ;;  %674 = vperm.xlu2 %1157, %v1355_v5  }
 0x169   :  { %v510_v30 = vadd.f32 %v506_v26, %v485_v41  ;;  %670 = vperm.xlu1 %1159, %v1348_v3  }
 0x16b   :  { %v467_v17 = vpop.permute.xlu1 %466 }
 0x16c   :  { %v479_v63 = vmul.f32 %v1616_v20, %v467_v17  ;;  %v521_v49 = vpop.permute.xlu2 %520 }
 0x16d   :  { %v530_v58 = vmul.f32 %v1629_v32, %v521_v49 }
 0x16e   :  { %v483_v19 = vadd.f32 %v479_v63, %v458_v42 }
 0x170   :  { %1161 = vset.pattern.permute.xlu2 %v1308_v46  ;;  %v508_v56 = vadd.f32 %v504_v15, %v483_v19 }
 0x171   :  { %1160 = vset.pattern.permute.xlu1 %v1308_v46  ;;  %691 = vperm.xlu2 %1161, %v1353_v4  }
 0x172   :  { %687 = vperm.xlu1 %1160, %v1346_v2  }
 0x174   :  { %v488_v33 = vpop.permute.xlu1 %487 }
 0x175   :  { %v503_v48 = vmul.f32 %v502_v14, %v488_v33  ;;  %v538_v21 = vpop.permute.xlu2 %537 }
 0x176   :  { %v553_v45 = vmul.f32 %v1649_v16, %v538_v21 }
 0x177   :  { %v507_v61 = vadd.f32 %v503_v48, %v482_v9 }
 0x179   :  { %v532_v20 = vadd.f32 %v1635_v18, %v507_v61  ;;  %1163 = vset.pattern.permute.xlu2 %v1309_v13 }
 0x17a   :  { %699 = vperm.xlu1 %1160, %v1355_v5   ;;  %712 = vperm.xlu2 %1163, %v1346_v2  }
 0x17b   :  { %v557_v42 = vadd.f32 %v553_v45, %v532_v20 }
 0x17c   :  { %v496_v46 = vpop.permute.xlu1 %495 }
 0x17d   :  { %v505_v40 = vmul.f32 %v502_v14, %v496_v46  ;;  %v550_v59 = vpop.permute.xlu2 %549 }
 0x17e   :  { %v556_v0 = vmul.f32 %v1649_v16, %v550_v59 }
 0x17f   :  { %v509_v36 = vadd.f32 %v505_v40, %v484_v28 }
 0x181   :  { %v534_v51 = vadd.f32 %v530_v58, %v509_v36 }
 0x182   :  { %1164 = vset.pattern.permute.xlu1 %v1309_v13  ;;  %720 = vperm.xlu2 %1163, %v1348_v3  }
 0x183   :  { %716 = vperm.xlu1 %1164, %v1353_v4  }
 0x185   :  { %v517_v18 = vpop.permute.xlu1 %516 }
 0x186   :  { %v529_v11 = vmul.f32 %v1629_v32, %v517_v18  ;;  %v567_v57 = vpop.permute.xlu2 %566 }
 0x187   :  { %v579_v7 = vmul.f32 %v1671_v23, %v567_v57 }
 0x188   :  { %v533_v15 = vadd.f32 %v529_v11, %v508_v56  ;;  %v1770_v56 = vld [vmem:[#allocation5 + $0x18] sm:$0xff] }
 0x18a   :  { %v558_v14 = vadd.f32 %v1657_v24, %v533_v15  ;;  %1167 = vset.pattern.permute.xlu2 %v1320_v35 }
 0x18b   :  { %1166 = vset.pattern.permute.xlu1 %v1320_v35  ;;  %741 = vperm.xlu2 %1167, %v1353_v4  }
 0x18c   :  { %v583_v28 = vadd.f32 %v579_v7, %v558_v14  ;;  %737 = vperm.xlu1 %1166, %v1346_v2  }
 0x18d   :  { %v525_v13 = vpop.permute.xlu1 %524 }
 0x18e   :  { %v531_v9 = vmul.f32 %v1629_v32, %v525_v13  ;;  %v1763_v32 = vld [vmem:[#allocation5 + $0x10] sm:$0xff] }
 0x18f   :  { %v588_v10 = vpop.permute.xlu2 %587 }
 0x190   :  { %v535_v50 = vadd.f32 %v531_v9, %v510_v30  ;;  %v603_v54 = vmul.f32 %v1687_v47, %v588_v10 }
 0x192   :  { %v560_v26 = vadd.f32 %v556_v0, %v535_v50 }
 0x193   :  { %749 = vperm.xlu2 %1167, %v1355_v5  }
 0x194   :  { %745 = vperm.xlu1 %1166, %v1348_v3  }
 0x196   :  { %v546_v24 = vpop.permute.xlu1 %545 }
 0x197   :  { %v555_v12 = vmul.f32 %v1649_v16, %v546_v24  ;;  %v596_v41 = vpop.permute.xlu2 %595  ;;  %v627_v16 = vperm.slane %v1680_v62, 1 }
 0x198   :  { %v605_v17 = vmul.f32 %v1687_v47, %v596_v41 }
 0x199   :  { %v559_v63 = vadd.f32 %v555_v12, %v534_v51  ;;  %v677_v51 = vperm.slane %v1680_v62, 3 }
 0x19b   :  { %v584_v2 = vadd.f32 %v1676_v53, %v559_v63  ;;  %1170 = vset.pattern.permute.xlu2 %v1310_v55 }
 0x19c   :  { %1169 = vset.pattern.permute.xlu1 %v1310_v55  ;;  %770 = vperm.xlu2 %1170, %v1763_v32   ;;  %v1773_v55 = vld [vmem:[#allocation5] sm:$0xff] }
 0x19d   :  { %v609_v5 = vadd.f32 %v605_v17, %v584_v2  ;;  %766 = vperm.xlu1 %1169, %v1353_v4  }
 0x19f   :  { %v563_v3 = vpop.permute.xlu1 %562 }
 0x1a0   :  { %v578_v30 = vmul.f32 %v1671_v23, %v563_v3  ;;  %v617_v49 = vpop.permute.xlu2 %616 }
 0x1a1   :  { %v629_v58 = vmul.f32 %v627_v16, %v617_v49 }
 0x1a2   :  { %v582_v19 = vadd.f32 %v578_v30, %v557_v42  ;;  %v652_v42 = vperm.slane %v1680_v62, 2  ;;  %v727_v30 = vperm.slane %v1680_v62, 5 }
 0x1a4   :  { %1171 = vset.pattern.permute.xlu2 %v1311_v27  ;;  %v607_v53 = vadd.f32 %v603_v54, %v582_v19 }
 0x1a5   :  { %774 = vperm.xlu1 %1169, %v1770_v56   ;;  %787 = vperm.xlu2 %1171, %v1773_v55  }
 0x1a7   :  { %v575_v4 = vpop.permute.xlu1 %574 }
 0x1a8   :  { %v581_v33 = vmul.f32 %v1671_v23, %v575_v4  ;;  %v625_v48 = vpop.permute.xlu2 %624 }
 0x1a9   :  { %v631_v21 = vmul.f32 %v627_v16, %v625_v48 }
 0x1aa   :  { %v585_v45 = vadd.f32 %v581_v33, %v560_v26  ;;  %v702_v26 = vperm.slane %v1680_v62, 4 }
 0x1ac   :  { %v610_v61 = vadd.f32 %v1693_v52, %v585_v45  ;;  %v1785_v52 = vld [vmem:[#allocation5 + $0x8] sm:$0xff] }
 0x1ad   :  { %1173 = vset.pattern.permute.xlu1 %v1311_v27  ;;  %799 = vperm.xlu2 %1171, %v1770_v56   ;;  %v638_v27 = vpop.permute.xlu0 %637 }
 0x1ae   :  { %v635_v20 = vadd.f32 %v631_v21, %v610_v61  ;;  %795 = vperm.xlu1 %1173, %v1763_v32   ;;  %v653_v7 = vmul.f32 %v652_v42, %v638_v27 }
 0x1b0   :  { %v592_v46 = vpop.permute.xlu1 %591 }
 0x1b1   :  { %v604_v40 = vmul.f32 %v1687_v47, %v592_v46  ;;  %v646_v59 = vpop.permute.xlu2 %645 }
 0x1b2   :  { %v655_v0 = vmul.f32 %v652_v42, %v646_v59 }
 0x1b3   :  { %v608_v23 = vadd.f32 %v604_v40, %v583_v28 }
 0x1b5   :  { %1175 = vset.pattern.permute.xlu2 %v1312_v8  ;;  %v633_v36 = vadd.f32 %v629_v58, %v608_v23  ;;  %v667_v54 = vpop.permute.xlu0 %666 }
 0x1b6   :  { %1174 = vset.pattern.permute.xlu1 %v1312_v8  ;;  %816 = vperm.xlu2 %1175, %v1785_v52   ;;  %v679_v63 = vmul.f32 %v677_v51, %v667_v54 }
 0x1b7   :  { %812 = vperm.xlu1 %1174, %v1773_v55  }
 0x1b9   :  { %v613_v18 = vpop.permute.xlu1 %612 }
 0x1ba   :  { %v628_v11 = vmul.f32 %v627_v16, %v613_v18  ;;  %v663_v47 = vpop.permute.xlu2 %662 }
 0x1bb   :  { %v678_v57 = vmul.f32 %v677_v51, %v663_v47 }
 0x1bc   :  { %v632_v15 = vadd.f32 %v628_v11, %v607_v53 }
 0x1bd   :  { %v696_v33 = vpop.permute.xlu0 %695 }
 0x1be   :  { %v657_v14 = vadd.f32 %v653_v7, %v632_v15  ;;  %1177 = vset.pattern.permute.xlu2 %v1314_v6  ;;  %v705_v46 = vmul.f32 %v702_v26, %v696_v33 }
 0x1bf   :  { %824 = vperm.xlu1 %1174, %v1770_v56   ;;  %837 = vperm.xlu2 %1177, %v1773_v55  }
 0x1c0   :  { %v682_v8 = vadd.f32 %v678_v57, %v657_v14 }
 0x1c1   :  { %v621_v35 = vpop.permute.xlu1 %620 }
 0x1c2   :  { %v630_v28 = vmul.f32 %v627_v16, %v621_v35  ;;  %v675_v13 = vpop.permute.xlu2 %674  ;;  %v1321_v16 = vmov 27   ;;  %v71_v35 = vmul.f32 %v1428_v34, %v1408_v25  ;;  %v777_v25 = vperm.slane %v1680_v62, 7 }
 0x1c3   :  { %v681_v9 = vmul.f32 %v677_v51, %v675_v13 }
 0x1c4   :  { %v634_v10 = vadd.f32 %v630_v28, %v609_v5  ;;  %v112_v28 = vmul.f32 %v1434_v37, %v1437_v39 }
 0x1c6   :  { %v659_v50 = vadd.f32 %v655_v0, %v634_v10  ;;  %v752_v0 = vperm.slane %v1680_v62, 6 }
 0x1c7   :  { %1178 = vset.pattern.permute.xlu1 %v1314_v6  ;;  %845 = vperm.xlu2 %1177, %v1763_v32  }
 0x1c8   :  { %841 = vperm.xlu1 %1178, %v1785_v52  }
 0x1ca   :  { %v642_v24 = vpop.permute.xlu1 %641 }
 0x1cb   :  { %v654_v12 = vmul.f32 %v652_v42, %v642_v24  ;;  %v692_v41 = vpop.permute.xlu2 %691 }
 0x1cc   :  { %v704_v17 = vmul.f32 %v702_v26, %v692_v41 }
 0x1cd   :  { %v658_v2 = vadd.f32 %v654_v12, %v633_v36 }
 0x1cf   :  { %v683_v3 = vadd.f32 %v679_v63, %v658_v2  ;;  %1181 = vset.pattern.permute.xlu2 %v1321_v16 }
 0x1d0   :  { %1180 = vset.pattern.permute.xlu1 %v1321_v16  ;;  %866 = vperm.xlu2 %1181, %v1785_v52  }
 0x1d1   :  { %v708_v6 = vadd.f32 %v704_v17, %v683_v3  ;;  %862 = vperm.xlu1 %1180, %v1773_v55  }
 0x1d2   :  { %v650_v5 = vpop.permute.xlu1 %649 }
 0x1d3   :  { %v656_v49 = vmul.f32 %v652_v42, %v650_v5 }
 0x1d4   :  { %v713_v58 = vpop.permute.xlu2 %712 }
 0x1d5   :  { %v660_v19 = vadd.f32 %v656_v49, %v635_v20  ;;  %v728_v53 = vmul.f32 %v727_v30, %v713_v58 }
 0x1d7   :  { %v685_v4 = vadd.f32 %v681_v9, %v660_v19  ;;  %v91_v9 = vadd.f32 %v1418_v29, %v71_v35 }
 0x1d8   :  { %874 = vperm.xlu2 %1181, %v1770_v56  }
 0x1d9   :  { %870 = vperm.xlu1 %1180, %v1763_v32   ;;  %v116_v54 = vadd.f32 %v112_v28, %v91_v9 }
 0x1db   :  { %v671_v48 = vpop.permute.xlu1 %670  ;;  %v161_v39 = vmax.f32 %v116_v54, 0.0 }
 0x1dc   :  { %v680_v21 = vmul.f32 %v677_v51, %v671_v48  ;;  %v721_v45 = vpop.permute.xlu2 %720 }
 0x1dd   :  { %v730_v61 = vmul.f32 %v727_v30, %v721_v45 }
 0x1de   :  { %v684_v40 = vadd.f32 %v680_v21, %v659_v50 }
 0x1e0   :  { %v709_v59 = vadd.f32 %v705_v46, %v684_v40  ;;  %1184 = vset.pattern.permute.xlu2 %v1315_v22 }
 0x1e1   :  { %1183 = vset.pattern.permute.xlu1 %v1315_v22  ;;  %895 = vperm.xlu2 %1184, %v1763_v32   ;;  %v725_v22 = vpop.permute.xlu0 %724 }
 0x1e2   :  { %v734_v20 = vadd.f32 %v730_v61, %v709_v59  ;;  %891 = vperm.xlu1 %1183, %v1785_v52   ;;  %v731_v15 = vmul.f32 %v727_v30, %v725_v22 }
 0x1e4   :  { %v688_v42 = vpop.permute.xlu1 %687 }
 0x1e5   :  { %v703_v23 = vmul.f32 %v702_v26, %v688_v42  ;;  %v742_v36 = vpop.permute.xlu2 %741 }
 0x1e6   :  { %v754_v27 = vmul.f32 %v752_v0, %v742_v36 }
 0x1e7   :  { %v707_v51 = vadd.f32 %v703_v23, %v682_v8  ;;  %v137_v8 = vmul.f32 %v1443_v43, %v1422_v31 }
 0x1e9   :  { %1185 = vset.pattern.permute.xlu2 %v1316_v60  ;;  %v732_v18 = vadd.f32 %v728_v53, %v707_v51  ;;  %v157_v10 = vadd.f32 %v1479_v1, %v137_v8 }
 0x1ea   :  { %899 = vperm.xlu1 %1183, %v1770_v56   ;;  %912 = vperm.xlu2 %1185, %v1773_v55  }
 0x1eb   :  { %v165_v31 = vmax.f32 %v157_v10, 0.0 }
 0x1ec   :  { %v700_v11 = vpop.permute.xlu1 %699 }
 0x1ed   :  { %v706_v47 = vmul.f32 %v702_v26, %v700_v11  ;;  %v750_v57 = vpop.permute.xlu2 %749  ;;  %v1822_v29 = vadd.f32 %v165_v31, %v161_v39 }
 0x1ee   :  { %v756_v7 = vmul.f32 %v752_v0, %v750_v57 }
 0x1ef   :  { %v710_v14 = vadd.f32 %v706_v47, %v685_v4  ;;  %v802_v62 = vperm.slane %v1822_v29, 0  ;;  %v1322_v4 = vmov 39   ;;  %v827_v33 = vperm.slane %v1822_v29, 1 }
 0x1f0   :  { %1197 = vset.pattern.permute.xlu0 %v1322_v4 }
 0x1f1   :  { %v735_v13 = vadd.f32 %v731_v15, %v710_v14  ;;  %1020 = vperm.xlu0 %1197, %v1773_v55  }
 0x1f2   :  { %1187 = vset.pattern.permute.xlu1 %v1316_v60  ;;  %924 = vperm.xlu2 %1185, %v1770_v56   ;;  %v763_v60 = vpop.permute.xlu0 %762 }
 0x1f3   :  { %v760_v50 = vadd.f32 %v756_v7, %v735_v13  ;;  %920 = vperm.xlu1 %1187, %v1763_v32   ;;  %v778_v2 = vmul.f32 %v777_v25, %v763_v60 }
 0x1f5   :  { %v717_v34 = vpop.permute.xlu1 %716 }
 0x1f6   :  { %v729_v43 = vmul.f32 %v727_v30, %v717_v34  ;;  %v771_v26 = vpop.permute.xlu2 %770 }
 0x1f7   :  { %v780_v37 = vmul.f32 %v777_v25, %v771_v26 }
 0x1f8   :  { %v733_v24 = vadd.f32 %v729_v43, %v708_v6 }
 0x1fa   :  { %1189 = vset.pattern.permute.xlu2 %v1317_v38  ;;  %v758_v1 = vadd.f32 %v754_v27, %v733_v24 }
 0x1fb   :  { %1188 = vset.pattern.permute.xlu1 %v1317_v38  ;;  %941 = vperm.xlu2 %1189, %v1785_v52  }
 0x1fc   :  { %937 = vperm.xlu1 %1188, %v1773_v55  }
 0x1fe   :  { %v738_v12 = vpop.permute.xlu1 %737 }
 0x1ff   :  { %v753_v41 = vmul.f32 %v752_v0, %v738_v12  ;;  %v788_v17 = vpop.permute.xlu2 %787 }
 0x200   :  { %v803_v63 = vmul.f32 %v802_v62, %v788_v17  ;;  %v902_v17 = vperm.slane %v1822_v29, 4 }
 0x201   :  { %v757_v3 = vadd.f32 %v753_v41, %v732_v18 }
 0x203   :  { %v782_v16 = vadd.f32 %v778_v2, %v757_v3  ;;  %1192 = vset.pattern.permute.xlu2 %v1318_v44 }
 0x204   :  { %1191 = vset.pattern.permute.xlu1 %v1318_v44  ;;  %966 = vperm.xlu2 %1192, %v1785_v52   ;;  %v792_v44 = vpop.permute.xlu0 %791 }
 0x205   :  { %v807_v6 = vadd.f32 %v803_v63, %v782_v16  ;;  %962 = vperm.xlu1 %1191, %v1773_v55   ;;  %v804_v46 = vmul.f32 %v802_v62, %v792_v44  ;;  %v927_v16 = vperm.slane %v1822_v29, 5 }
 0x206   :  { %v746_v5 = vpop.permute.xlu1 %745 }
 0x207   :  { %v755_v30 = vmul.f32 %v752_v0, %v746_v5  ;;  %v800_v49 = vpop.permute.xlu2 %799  ;;  %v852_v0 = vperm.slane %v1822_v29, 2 }
 0x208   :  { %v806_v58 = vmul.f32 %v802_v62, %v800_v49 }
 0x209   :  { %v759_v19 = vadd.f32 %v755_v30, %v734_v20  ;;  %v1323_v20 = vmov 38  }
 0x20b   :  { %v784_v53 = vadd.f32 %v780_v37, %v759_v19 }
 0x20c   :  { %970 = vperm.xlu2 %1192, %v1763_v32   ;;  %v821_v22 = vpop.permute.xlu0 %820 }
 0x20d   :  { %1193 = vset.pattern.permute.xlu1 %v1317_v38  ;;  %v830_v57 = vmul.f32 %v827_v33, %v821_v22 }
 0x20e   :  { %949 = vperm.xlu1 %1193, %v1770_v56  }
 0x20f   :  { %v767_v48 = vpop.permute.xlu1 %766 }
 0x210   :  { %v779_v21 = vmul.f32 %v777_v25, %v767_v48  ;;  %v817_v45 = vpop.permute.xlu2 %816 }
 0x211   :  { %v829_v61 = vmul.f32 %v827_v33, %v817_v45 }
 0x212   :  { %v783_v40 = vadd.f32 %v779_v21, %v758_v1 }
 0x214   :  { %v808_v59 = vadd.f32 %v804_v46, %v783_v40  ;;  %1196 = vset.pattern.permute.xlu2 %v1323_v20  ;;  %v850_v10 = vpop.permute.xlu0 %849  ;;  %v952_v40 = vperm.slane %v1822_v29, 6 }
 0x215   :  { %995 = vperm.xlu2 %1196, %v1785_v52  }
 0x216   :  { %v833_v38 = vadd.f32 %v829_v61, %v808_v59  ;;  %1195 = vset.pattern.permute.xlu1 %v1323_v20 }
 0x217   :  { %991 = vperm.xlu1 %1195, %v1773_v55   ;;  %v775_v42 = vpop.permute.xlu1 %774 }
 0x218   :  { %v781_v23 = vmul.f32 %v777_v25, %v775_v42  ;;  %v856_v25 = vmul.f32 %v852_v0, %v850_v10 }
 0x219   :  { %v838_v36 = vpop.permute.xlu2 %837 }
 0x21a   :  { %v785_v27 = vadd.f32 %v781_v23, %v760_v50  ;;  %v853_v51 = vmul.f32 %v852_v0, %v838_v36  ;;  %v977_v23 = vperm.slane %v1822_v29, 7 }
 0x21c   :  { %v810_v18 = vadd.f32 %v806_v58, %v785_v27  ;;  %v888_v12 = vpop.permute.xlu0 %887 }
 0x21d   :  { %1003 = vperm.xlu2 %1196, %v1770_v56   ;;  %v903_v3 = vmul.f32 %v902_v17, %v888_v12 }
 0x21f   :  { %999 = vperm.xlu1 %1195, %v1763_v32   ;;  %v877_v32 = vperm.slane %v1822_v29, 3 }
 0x220   :  { %v796_v11 = vpop.permute.xlu1 %795 }
 0x221   :  { %v805_v47 = vmul.f32 %v802_v62, %v796_v11  ;;  %v846_v52 = vpop.permute.xlu2 %845 }
 0x222   :  { %v855_v55 = vmul.f32 %v852_v0, %v846_v52 }
 0x223   :  { %v809_v7 = vadd.f32 %v805_v47, %v784_v53 }
 0x224   :  { %v917_v48 = vpop.permute.xlu0 %916 }
 0x225   :  { %v834_v15 = vadd.f32 %v830_v57, %v809_v7  ;;  %v929_v46 = vmul.f32 %v927_v16, %v917_v48 }
 0x227   :  { %v859_v14 = vadd.f32 %v855_v55, %v834_v15 }
 0x229   :  { %v813_v35 = vpop.permute.xlu1 %812 }
 0x22a   :  { %v828_v8 = vmul.f32 %v827_v33, %v813_v35  ;;  %v867_v28 = vpop.permute.xlu2 %866 }
 0x22b   :  { %v879_v1 = vmul.f32 %v877_v32, %v867_v28 }
 0x22c   :  { %v832_v13 = vadd.f32 %v828_v8, %v807_v6  ;;  %v946_v52 = vpop.permute.xlu0 %945 }
 0x22d   :  { %v955_v55 = vmul.f32 %v952_v40, %v946_v52 }
 0x22e   :  { %v857_v9 = vadd.f32 %v853_v51, %v832_v13 }
 0x231   :  { %v825_v50 = vpop.permute.xlu1 %824 }
 0x232   :  { %v831_v54 = vmul.f32 %v827_v33, %v825_v50  ;;  %v875_v56 = vpop.permute.xlu2 %874 }
 0x233   :  { %v881_v43 = vmul.f32 %v877_v32, %v875_v56 }
 0x234   :  { %v835_v34 = vadd.f32 %v831_v54, %v810_v18  ;;  %v975_v56 = vpop.permute.xlu0 %974 }
 0x236   :  { %v860_v31 = vadd.f32 %v856_v25, %v835_v34  ;;  %v981_v34 = vmul.f32 %v977_v23, %v975_v56 }
 0x238   :  { %v885_v26 = vadd.f32 %v881_v43, %v860_v31 }
 0x23a   :  { %v842_v37 = vpop.permute.xlu1 %841 }
 0x23b   :  { %v854_v39 = vmul.f32 %v852_v0, %v842_v37  ;;  %v896_v24 = vpop.permute.xlu2 %895 }
 0x23c   :  { %v905_v4 = vmul.f32 %v902_v17, %v896_v24 }
 0x23d   :  { %v858_v60 = vadd.f32 %v854_v39, %v833_v38 }
 0x23f   :  { %v883_v62 = vadd.f32 %v879_v1, %v858_v60 }
 0x243   :  { %v863_v41 = vpop.permute.xlu1 %862 }
 0x244   :  { %v878_v63 = vmul.f32 %v877_v32, %v863_v41  ;;  %v913_v2 = vpop.permute.xlu2 %912 }
 0x245   :  { %v928_v30 = vmul.f32 %v927_v16, %v913_v2 }
 0x246   :  { %v882_v6 = vadd.f32 %v878_v63, %v857_v9 }
 0x248   :  { %v907_v5 = vadd.f32 %v903_v3, %v882_v6 }
 0x24a   :  { %v932_v49 = vadd.f32 %v928_v30, %v907_v5 }
 0x24b   :  { %v871_v58 = vpop.permute.xlu1 %870 }
 0x24c   :  { %v880_v19 = vmul.f32 %v877_v32, %v871_v58  ;;  %v925_v53 = vpop.permute.xlu2 %924 }
 0x24d   :  { %v931_v51 = vmul.f32 %v927_v16, %v925_v53 }
 0x24e   :  { %v884_v44 = vadd.f32 %v880_v19, %v859_v14 }
 0x250   :  { %v909_v33 = vadd.f32 %v905_v4, %v884_v44 }
 0x254   :  { %v892_v21 = vpop.permute.xlu1 %891 }
 0x255   :  { %v904_v45 = vmul.f32 %v902_v17, %v892_v21  ;;  %v942_v61 = vpop.permute.xlu2 %941 }
 0x256   :  { %v954_v38 = vmul.f32 %v952_v40, %v942_v61 }
 0x257   :  { %v908_v59 = vadd.f32 %v904_v45, %v883_v62 }
 0x259   :  { %v933_v20 = vadd.f32 %v929_v46, %v908_v59 }
 0x25b   :  { %v958_v42 = vadd.f32 %v954_v38, %v933_v20 }
 0x25c   :  { %v900_v0 = vpop.permute.xlu1 %899 }
 0x25d   :  { %v906_v36 = vmul.f32 %v902_v17, %v900_v0 }
 0x25e   :  { %v967_v27 = vpop.permute.xlu2 %966 }
 0x25f   :  { %v910_v18 = vadd.f32 %v906_v36, %v885_v26  ;;  %v979_v22 = vmul.f32 %v977_v23, %v967_v27 }
 0x261   :  { %v983_v11 = vadd.f32 %v979_v22, %v958_v42  ;;  %v935_v47 = vadd.f32 %v931_v51, %v910_v18 }
 0x263   :  { %v987_v37 = vmax.f32 %v983_v11, 0.0  ;;  %v1021_v53 = vpop.permute.xlu0 %1020 }
 0x265   :  { %v921_v57 = vpop.permute.xlu1 %920 }
 0x266   :  { %v930_v7 = vmul.f32 %v927_v16, %v921_v57  ;;  %v971_v15 = vpop.permute.xlu2 %970 }
 0x267   :  { %v980_v8 = vmul.f32 %v977_v23, %v971_v15 }
 0x268   :  { %v934_v14 = vadd.f32 %v930_v7, %v909_v33 }
 0x26a   :  { %v959_v35 = vadd.f32 %v955_v55, %v934_v14 }
 0x26c   :  { %v984_v28 = vadd.f32 %v980_v8, %v959_v35 }
 0x26e   :  { %v938_v13 = vpop.permute.xlu1 %937  ;;  %v988_v41 = vmax.f32 %v984_v28, 0.0 }
 0x26f   :  { %v953_v9 = vmul.f32 %v952_v40, %v938_v13  ;;  %v996_v26 = vpop.permute.xlu2 %995 }
 0x270   :  { %v1007_v1 = vmul.f32 %v996_v26, %v987_v37 }
 0x271   :  { %v957_v10 = vadd.f32 %v953_v9, %v932_v49 }
 0x277   :  { %v963_v29 = vpop.permute.xlu1 %962  ;;  %v1004_v17 = vpop.permute.xlu2 %1003 }
 0x278   :  { %v978_v50 = vmul.f32 %v977_v23, %v963_v29 }
 0x27a   :  { %v982_v54 = vadd.f32 %v978_v50, %v957_v10 }
 0x27c   :  { %v986_v39 = vmax.f32 %v982_v54, 0.0 }
 0x280   :  { %v950_v25 = vpop.permute.xlu1 %949 }
 0x281   :  { %v956_v32 = vmul.f32 %v952_v40, %v950_v25 }
 0x283   :  { %v960_v31 = vadd.f32 %v956_v32, %v935_v47 }
 0x285   :  { %v985_v43 = vadd.f32 %v981_v34, %v960_v31 }
 0x287   :  { %v989_v12 = vmax.f32 %v985_v43, 0.0 }
 0x289   :  { %v992_v24 = vpop.permute.xlu1 %991  ;;  %v1009_v3 = vmul.f32 %v1004_v17, %v989_v12 }
 0x28a   :  { %v1006_v60 = vmul.f32 %v992_v24, %v986_v39 }
 0x28c   :  { %v1010_v62 = vadd.f32 %v1007_v1, %v1006_v60 }
 0x291   :  { %v1000_v63 = vpop.permute.xlu1 %999 }
 0x292   :  { %v1008_v2 = vmul.f32 %v1000_v63, %v988_v41 }
 0x294   :  { %v1011_v16 = vadd.f32 %v1010_v62, %v1008_v2 }
 0x296   :  { %v1012_v6 = vadd.f32 %v1011_v16, %v1009_v3 }
 0x298   :  { %v1013_v5 = vrot.slane %v1012_v6, 4 }
 0x29a   :  { %v1014_v30 = vadd.f32 %v1013_v5, %v1012_v6 }
 0x29c   :  { %v1015_v49 = vrot.slane %v1014_v30, 2 }
 0x29e   :  { %v1016_v58 = vadd.f32 %v1015_v49, %v1014_v30 }
 0x2a0   :  { %v1017_v19 = vrot.slane %v1016_v58, 1 }
 0x2a2   :  { %v1018_v4 = vadd.f32 %v1017_v19, %v1016_v58 }
 0x2a4   :  { %v1023_v44 = vadd.f32 %v1021_v53, %v1018_v4 }
 0x2a6   :  { %1024 = vst [vmem:[#allocation7] sm:$0x1] %v1023_v44 }
 0x2a7   :  { %1035 = dma.vmem_to_hbm [thread:$0]  %s1031_s1, 16, %s1033_s23, [#allocation4]  }
 0x2a8   :  { %1278 = dma.done.wait [#allocation4], 16  }
 0x2a9   :  { %1279 = vsyncadd [#allocation4], 4294967280 }
 0x2aa   :  { %1040 = vsyncpa [#allocation3], 1 }
 0x2ab   :  { %1041 = vsyncpa [#allocation6], 1 }
 0x2ac   :  { %1042 = vsyncpa [#allocation4], 1 }

</bundles_post_ra>
